<compile_context>
chip_gen: v5e
topology: v5e:2x2
jax: 0.10.0
libtpu: 0.0.40
codegen_flags: <defaults>
</compile_context>

<pallas_src>
import functools

import jax
import jax.numpy as jnp
from jax.experimental import pallas as pl
from jax.experimental.pallas import tpu as pltpu

HIDDEN = 512        # conv1_da output channels (fixed by the module)
HIDDEN_CHUNK = 256  # hidden-dim tile: never materialize the full (512, tm) h


def _round_up(v, mult):
    return -(-v // mult) * mult


def _da_img_head_kernel(x_ref, w1_ref, b1_ref, w2_ref, b2_ref, o_ref, *,
                        hidden_chunk):
    """One (batch, pixel-tile) grid step.

    x_ref:  (1, C, tm)   pixel tile: channels on sublanes / pixels on lanes
    w1_ref: (512, C)     conv1 weight (PyTorch orientation), bf16
    b1_ref: (512, 1)     conv1 bias, f32
    w2_ref: (512, 1)     conv2 weight as a column, f32
    b2_ref: (1,)         conv2 bias, SMEM scalar
    o_ref:  (1, 1, tm)   lane-dense output tile
    """
    tm = x_ref.shape[2]
    x = x_ref[0].astype(jnp.bfloat16)        # (C, tm); no-op if already bf16

    # Running (1, tm) logit accumulator, seeded with the conv2 bias.
    acc = jnp.full((1, tm), b2_ref[0], jnp.float32)

    # Static unroll over hidden chunks: conv1 (MXU, f32 acc) + bias/relu +
    # 512->1 reduction (VPU mul + sublane sum) fused per chunk, all in f32.
    for s in range(0, HIDDEN, hidden_chunk):
        w1c = w1_ref[s:s + hidden_chunk, :].astype(jnp.bfloat16)   # (hc, C)
        h = jnp.dot(w1c, x, preferred_element_type=jnp.float32)    # (hc, tm)
        h = jnp.maximum(h + b1_ref[s:s + hidden_chunk, :], 0.0)
        acc = acc + jnp.sum(w2_ref[s:s + hidden_chunk, :] * h,
                            axis=0, keepdims=True)                 # (1, tm)

    o_ref[0] = acc.astype(o_ref.dtype)


@functools.lru_cache(maxsize=1)
def _vmem_config():
    """(working-set budget, vmem_limit_bytes, tm cap) from device VMEM size."""
    try:
        cap = int(pltpu.get_tpu_info().vmem_capacity_bytes)
    except Exception:
        cap = None
    if cap is None or cap <= 64 * 1024 * 1024:
        # v7x (64 MiB per TensorCore) or unknown device: stay conservative.
        return 28 * 1024 * 1024, 44 * 1024 * 1024, 4096
    # v5e / v6e (128 MiB VMEM): bigger tiles amortize per-grid-step overhead.
    return 56 * 1024 * 1024, 96 * 1024 * 1024, 8192


def _choose_tm(n, c, m, x_bytes, w1_bytes, budget, tm_cap, hidden_chunk):
    """Largest pixel tile (multiple of 128, <= tm_cap) fitting the budget."""
    # Resident weights/biases (assume double-buffered) + slack.
    fixed = 2 * (HIDDEN * c * w1_bytes + HIDDEN * 4 + HIDDEN * 4) + 64 * 1024
    # Per pixel of tile: x (double-buffered) + its bf16 copy + ~2 live f32
    # copies of the (hidden_chunk, tm) intermediate + output (double-buffered).
    per_tm = 2 * c * x_bytes + c * 2 + 2 * hidden_chunk * 4 + 2 * 4
    tm = (budget - fixed) // per_tm
    tm = max(128, min(tm_cap, (tm // 128) * 128))
    if m <= 128:
        return int(m)            # single block == full (unpadded) pixel axis
    tm = min(tm, _round_up(m, 128))
    # v7x has 2 TensorCores per chip: keep >= 2 parallel grid blocks.
    if n * ((m + tm - 1) // tm) < 2:
        tm = max(128, _round_up(-(-m // 2), 128))
    return int(tm)


@functools.partial(jax.jit,
                   static_argnames=("tm", "hidden_chunk", "vmem_limit"))
def _da_img_head_rows(x, w1, b1, w2, b2, *, tm, hidden_chunk, vmem_limit):
    """x: (N, C, M) pixels-last.  Returns logits (N, 1, M)."""
    n, c, m = x.shape
    grid = (n, (m + tm - 1) // tm)   # ragged last tile: Pallas masks it
    kernel = functools.partial(_da_img_head_kernel, hidden_chunk=hidden_chunk)
    return pl.pallas_call(
        kernel,
        out_shape=jax.ShapeDtypeStruct((n, 1, m), x.dtype),
        grid=grid,
        in_specs=[
            pl.BlockSpec((1, c, tm), lambda b, i: (b, 0, i)),      # x tile
            # Constant index_map -> weights stay resident (no re-DMA between
            # grid steps).  pipeline_mode=pl.Buffered(1) could reclaim their
            # second buffer (~0.5 MB at C=256) if VMEM ever gets tight on v7x.
            pl.BlockSpec((HIDDEN, c), lambda b, i: (0, 0)),        # w1
            pl.BlockSpec((HIDDEN, 1), lambda b, i: (0, 0)),        # b1
            pl.BlockSpec((HIDDEN, 1), lambda b, i: (0, 0)),        # w2 column
            pl.BlockSpec(memory_space=pltpu.MemorySpace.SMEM),     # b2 scalar
        ],
        out_specs=pl.BlockSpec((1, 1, tm), lambda b, i: (b, 0, i)),
        compiler_params=pltpu.CompilerParams(
            dimension_semantics=("parallel", "parallel"),          # megacore
            vmem_limit_bytes=vmem_limit,
        ),
    )(x, w1, b1, w2, b2)


def da_img_head_forward(features, params):
    """features: list of NCHW arrays. Returns list of (N, 1, H, W) logits."""
    w1, b1, w2, b2 = params
    budget, vmem_limit, tm_cap = _vmem_config()
    outs = []
    for f in features:   # one pallas_call per FPN level: no concat, no pad
        n, c, h, w = f.shape
        m = h * w
        x = f.reshape(n, c, m)          # contiguous NCHW reshape: no transpose
        tm = _choose_tm(n, c, m,
                        jnp.dtype(x.dtype).itemsize,
                        jnp.dtype(w1.dtype).itemsize,
                        budget, tm_cap, HIDDEN_CHUNK)
        y = _da_img_head_rows(x, w1, b1, w2, b2, tm=tm,
                              hidden_chunk=HIDDEN_CHUNK,
                              vmem_limit=vmem_limit)     # (N, 1, M)
        outs.append(y.reshape(n, 1, h, w))
    return outs


def init_da_img_head_params(key, in_channels, weight_dtype=jnp.bfloat16):
    """Mirror the PyTorch init: normal(std=0.001) weights, zero biases.
    conv1 weight (512, C, 1, 1) -> (512, C) (bf16 by default, halves its DMA);
    conv2 weight (1, 512, 1, 1) -> (512, 1) column, kept f32 so the in-kernel
    512->1 reduction stays in f32.  Biases stay f32."""
    k1, k2 = jax.random.split(key)
    w1 = (jax.random.normal(k1, (HIDDEN, in_channels), jnp.float32)
          * 0.001).astype(weight_dtype)
    b1 = jnp.zeros((HIDDEN, 1), jnp.float32)
    w2 = jax.random.normal(k2, (HIDDEN, 1), jnp.float32) * 0.001
    b2 = jnp.zeros((1,), jnp.float32)
    return w1, b1, w2, b2


def _reference(features, params):
    """Pure-JAX f32 reference of the same forward (same bf16-rounded w1, so
    the only kernel/ref delta is the bf16 rounding of x in the first matmul)."""
    w1, b1, w2, b2 = params
    w1f = w1.astype(jnp.float32)
    w2f = w2.astype(jnp.float32)              # (512, 1)
    outs = []
    for f in features:
        n, c, hh, ww = f.shape
        x = f.reshape(n, c, hh * ww).astype(jnp.float32)
        h = jnp.maximum(jnp.einsum("oc,ncm->nom", w1f, x)
                        + b1.reshape(1, HIDDEN, 1), 0.0)
        y = jnp.einsum("ho,nhm->nom", w2f, h) + b2.reshape(1, 1, 1)
        outs.append(y.reshape(n, 1, hh, ww))
    return outs


if __name__ == "__main__":
    key = jax.random.PRNGKey(0)
    in_channels = 4
    kp, kx1, kx2 = jax.random.split(key, 3)

    params = init_da_img_head_params(kp, in_channels)

    # Two "FPN levels" of NCHW features (small shapes).
    feats = [
        jax.random.normal(kx1, (2, in_channels, 16, 16), jnp.float32),
        jax.random.normal(kx2, (2, in_channels, 8, 8), jnp.float32),
    ]

    outs = da_img_head_forward(feats, params)
    outs = [jax.block_until_ready(o) for o in outs]

    refs = _reference(feats, params)
    for o, r, f in zip(outs, refs, feats):
        assert o.shape == (f.shape[0], 1, f.shape[2], f.shape[3]), o.shape
        # conv1 uses bf16 operands (f32 acc); conv2 reduction is pure f32.
        assert jnp.allclose(o, r, rtol=5e-2, atol=2e-6), \
            float(jnp.max(jnp.abs(o - r)))

    print("KERNEL_OK")
</pallas_src>

<mosaic_0001>
module attributes {stable_mosaic.version = 11 : i64} {
  func.func @_da_img_head_kernel(%arg0: i32, %arg1: i32, %arg2: memref<1x4x256xf32, #tpu.memory_space<vmem>>, %arg3: memref<512x4xbf16, #tpu.memory_space<vmem>>, %arg4: memref<512x1xf32, #tpu.memory_space<vmem>>, %arg5: memref<512x1xf32, #tpu.memory_space<vmem>>, %arg6: memref<1xf32, #tpu.memory_space<smem>>, %arg7: memref<1x1x256xf32, #tpu.memory_space<vmem>>) attributes {dimension_semantics = [#tpu.dimension_semantics<parallel>, #tpu.dimension_semantics<parallel>], iteration_bounds = array<i64: 2, 1>, scalar_prefetch = 0 : i64, scratch_operands = 0 : i64, tpu.core_type = #tpu.core_type<tc>, window_params = [{transform_indices = @transform_0, window_bounds = array<i64: 1, 4, 256>}, {pipeline_mode = #tpu.pipeline_mode<synchronous>, transform_indices = @transform_1, window_bounds = array<i64: 512, 4>}, {pipeline_mode = #tpu.pipeline_mode<synchronous>, transform_indices = @transform_2, window_bounds = array<i64: 512, 1>}, {pipeline_mode = #tpu.pipeline_mode<synchronous>, transform_indices = @transform_3, window_bounds = array<i64: 512, 1>}, {transform_indices = @transform_4, window_bounds = array<i64: 1>}, {transform_indices = @transform_5, window_bounds = array<i64: 1, 1, 256>}]} {
    %c0 = arith.constant 0 : index
    %c0_0 = arith.constant 0 : index
    %c0_1 = arith.constant 0 : index
    %0 = vector.load %arg2[%c0, %c0_0, %c0_1] : memref<1x4x256xf32, #tpu.memory_space<vmem>>, vector<1x4x256xf32>
    %1 = vector.shape_cast %0 : vector<1x4x256xf32> to vector<4x256xf32>
    %2 = arith.truncf %1 : vector<4x256xf32> to vector<4x256xbf16>
    %c0_2 = arith.constant 0 : index
    %3 = memref.load %arg6[%c0_2] : memref<1xf32, #tpu.memory_space<smem>>
    %4 = vector.broadcast %3 : f32 to vector<1x256xf32>
    %c0_3 = arith.constant 0 : index
    %c0_4 = arith.constant 0 : index
    %5 = vector.load %arg3[%c0_3, %c0_4] : memref<512x4xbf16, #tpu.memory_space<vmem>>, vector<256x4xbf16>
    %cst = arith.constant dense<0.000000e+00> : vector<256x256xf32>
    %6 = tpu.matmul %5, %2, %cst {dimension_numbers = #tpu.dot_dimension_numbers<[1], [0], [0], [1], [0, 0, 1, 1], [], []>} : vector<256x4xbf16>, vector<4x256xbf16>, vector<256x256xf32> -> vector<256x256xf32>
    %c0_5 = arith.constant 0 : index
    %c0_6 = arith.constant 0 : index
    %7 = vector.load %arg4[%c0_5, %c0_6] : memref<512x1xf32, #tpu.memory_space<vmem>>, vector<256x1xf32>
    %8 = vector.broadcast %7 : vector<256x1xf32> to vector<256x256xf32>
    %9 = arith.addf %6, %8 : vector<256x256xf32>
    %cst_7 = arith.constant 0.000000e+00 : f32
    %10 = vector.broadcast %cst_7 : f32 to vector<256x256xf32>
    %11 = arith.maximumf %9, %10 : vector<256x256xf32>
    %c0_8 = arith.constant 0 : index
    %c0_9 = arith.constant 0 : index
    %12 = vector.load %arg5[%c0_8, %c0_9] : memref<512x1xf32, #tpu.memory_space<vmem>>, vector<256x1xf32>
    %13 = vector.broadcast %12 : vector<256x1xf32> to vector<256x256xf32>
    %14 = arith.mulf %13, %11 : vector<256x256xf32>
    %cst_10 = arith.constant dense<0.000000e+00> : vector<256xf32>
    %15 = vector.multi_reduction <add>, %14, %cst_10 [0] : vector<256x256xf32> to vector<256xf32>
    %16 = vector.shape_cast %15 : vector<256xf32> to vector<1x256xf32>
    %17 = arith.addf %4, %16 : vector<1x256xf32>
    %c256 = arith.constant 256 : index
    %c0_11 = arith.constant 0 : index
    %18 = vector.load %arg3[%c256, %c0_11] : memref<512x4xbf16, #tpu.memory_space<vmem>>, vector<256x4xbf16>
    %cst_12 = arith.constant dense<0.000000e+00> : vector<256x256xf32>
    %19 = tpu.matmul %18, %2, %cst_12 {dimension_numbers = #tpu.dot_dimension_numbers<[1], [0], [0], [1], [0, 0, 1, 1], [], []>} : vector<256x4xbf16>, vector<4x256xbf16>, vector<256x256xf32> -> vector<256x256xf32>
    %c256_13 = arith.constant 256 : index
    %c0_14 = arith.constant 0 : index
    %20 = vector.load %arg4[%c256_13, %c0_14] : memref<512x1xf32, #tpu.memory_space<vmem>>, vector<256x1xf32>
    %21 = vector.broadcast %20 : vector<256x1xf32> to vector<256x256xf32>
    %22 = arith.addf %19, %21 : vector<256x256xf32>
    %cst_15 = arith.constant 0.000000e+00 : f32
    %23 = vector.broadcast %cst_15 : f32 to vector<256x256xf32>
    %24 = arith.maximumf %22, %23 : vector<256x256xf32>
    %c256_16 = arith.constant 256 : index
    %c0_17 = arith.constant 0 : index
    %25 = vector.load %arg5[%c256_16, %c0_17] : memref<512x1xf32, #tpu.memory_space<vmem>>, vector<256x1xf32>
    %26 = vector.broadcast %25 : vector<256x1xf32> to vector<256x256xf32>
    %27 = arith.mulf %26, %24 : vector<256x256xf32>
    %cst_18 = arith.constant dense<0.000000e+00> : vector<256xf32>
    %28 = vector.multi_reduction <add>, %27, %cst_18 [0] : vector<256x256xf32> to vector<256xf32>
    %29 = vector.shape_cast %28 : vector<256xf32> to vector<1x256xf32>
    %30 = arith.addf %17, %29 : vector<1x256xf32>
    %c0_19 = arith.constant 0 : index
    %c0_20 = arith.constant 0 : index
    %c0_21 = arith.constant 0 : index
    %31 = vector.load %arg7[%c0_19, %c0_20, %c0_21] : memref<1x1x256xf32, #tpu.memory_space<vmem>>, vector<1x1x256xf32>
    %32 = vector.shape_cast %31 : vector<1x1x256xf32> to vector<1x256xf32>
    %33 = vector.shape_cast %30 : vector<1x256xf32> to vector<1x1x256xf32>
    tpu.vector_store %arg7[%c0_19, %c0_20, %c0_21], %33 {strides = array<i32>} : memref<1x1x256xf32, #tpu.memory_space<vmem>>, vector<1x1x256xf32>,
    return
  }
  func.func @transform_0(%arg0: i32, %arg1: i32) -> (i32, i32, i32) {
    %c0_i32 = arith.constant 0 : i32
    %c0_i32_0 = arith.constant 0 : i32
    return %arg0, %c0_i32, %arg1 : i32, i32, i32
  }
  func.func @transform_1(%arg0: i32, %arg1: i32) -> (i32, i32) {
    %c0_i32 = arith.constant 0 : i32
    %c0_i32_0 = arith.constant 0 : i32
    %c0_i32_1 = arith.constant 0 : i32
    return %c0_i32, %c0_i32_0 : i32, i32
  }
  func.func @transform_2(%arg0: i32, %arg1: i32) -> (i32, i32) {
    %c0_i32 = arith.constant 0 : i32
    %c0_i32_0 = arith.constant 0 : i32
    %c0_i32_1 = arith.constant 0 : i32
    return %c0_i32, %c0_i32_0 : i32, i32
  }
  func.func @transform_3(%arg0: i32, %arg1: i32) -> (i32, i32) {
    %c0_i32 = arith.constant 0 : i32
    %c0_i32_0 = arith.constant 0 : i32
    %c0_i32_1 = arith.constant 0 : i32
    return %c0_i32, %c0_i32_0 : i32, i32
  }
  func.func @transform_4(%arg0: i32, %arg1: i32) -> i32 {
    %c0_i32 = arith.constant 0 : i32
    %c0_i32_0 = arith.constant 0 : i32
    return %c0_i32 : i32
  }
  func.func @transform_5(%arg0: i32, %arg1: i32) -> (i32, i32, i32) {
    %c0_i32 = arith.constant 0 : i32
    %c0_i32_0 = arith.constant 0 : i32
    return %arg0, %c0_i32, %arg1 : i32, i32, i32
  }
}

</mosaic_0001>

<bundles_post_ra>
// kernel: _da_img_head_rows.1
= control target key start
LH: loop header
LB: loop body
LE: loop exit
PB: predicated region body
PF: predicated region fallthrough
CT: control target
= control target key end

     0   :  { %s3995_s0 = inlined_call_operand.vmem [shape: f32[2,4,256], index: 0, kind: input, shape index: {}]   ;;  %s3996_s1 = inlined_call_operand.vmem [shape: bf16[512,4], index: 1, kind: input, shape index: {}]   ;;  %s3997_s2 = inlined_call_operand.vmem [shape: f32[512,1], index: 2, kind: input, shape index: {}]   ;;  %s3998_s3 = inlined_call_operand.vmem [shape: f32[512,1], index: 3, kind: input, shape index: {}]   ;;  %s3999_s4 = inlined_call_operand.<no memory space> [shape: f32[1], index: 4, kind: input, shape index: {}]   ;;  %s4000_s5 = inlined_call_operand.hbm [shape: f32[2,1,256], index: 5, kind: output, shape index: {}]  }
   0x1   :  { %10 = sst [smem:[#allocation2]] %s3999_s4 }
   0x2   :  { %11 = vsyncpa [#allocation4], 0 }
   0x3   :  { %13 = vsyncpa [#allocation4 + $0x1], 0  ;;  %s2641_s20 = smov 0   ;;  %s2643_s21 = smov 0  }
   0x4   :  { %s2645_s22 = smov 0   ;;  %s2647_s23 = smov 0  }
   0x5   :  { %s2649_s24 = smov 0   ;;  %s2651_s25 = smov 0  }
   0x6 LB: > { %s2231_s4 = sadd.s32 4294967295, %s2605_s25   ;;  %s2232_s26 = sadd.s32 4294967294, %s2605_s25   ;;  %s2605_s25 = sphi %s2651_s25, %s19_s25   ;;  %s2601_s24 = sphi %s2649_s24, %s4154_s24   ;;  %s2597_s23 = sphi %s2647_s23, %s4153_s23   ;;  %s2593_s22 = sphi %s2645_s22, %s4152_s22   ;;  %s2589_s21 = sphi %s2643_s21, %s4151_s21   ;;  %s2585_s20 = sphi %s2641_s20, %s4150_s20  }
   0x7   : > { %s31_s27 = sadd.s32 1, %s2601_s24  ;;  %s152_s28 = sadd.s32 1, %s2593_s22 }
   0x8   : > { %p33_p0 = scmp.ge.s32.totalorder %s31_s27, 2  ;;  %p162_p1 = scmp.ne.s32.totalorder %s2593_s22, %s2589_s21 }
   0x9   : > { %p163_p2 = scmp.eq.s32.totalorder %s2231_s4, 1  ;;  %p168_p3 = scmp.ne.s32.totalorder %s2589_s21, %s2585_s20 }
   0xa   : > { %s4156_s27 = smov (%p33_p0, %s31_s27), 0  ;;  %p169_p5 = scmp.eq.s32.totalorder %s2232_s26, 1 }
   0xb   : > { %p2681_p4 = por %p163_p2, %p162_p1  ;;  %s147_s30 = ssub.s32 %s2601_s24, %s4156_s27 }
   0xc   : > { %p2235_p6 = scmp.ge.s32.totalorder %s2605_s25, 1  ;;  %p150_p7 = scmp.eq.s32.totalorder %s147_s30, 0 }
   0xd   : > { %p2688_p8 = por %p169_p5, %p168_p3  ;;  %p212_p9 = scmp.lt.s32.totalorder %s2605_s25, 3 }
   0xe   : > { %s2694_s7 = scalar_select %p150_p7, %s2593_s22, %s152_s28  }
   0xf   : > { %p213_p10 = pnand %p2235_p6, %p212_p9 }
  0x11   : > { %216 = sbr.rel (%p213_p10) target bundleno = 502 (0x1f6), region = 40 }
  0x16   : > { %v303_v0 = vld [vmem:[%s3997_s2 + $0x20] sm:$0xff]  ;;  %v301_v1 = vld [vmem:[%s3997_s2 + $0x10] sm:$0xff]  ;;  %p245_p11 = scmp.lt.s32.totalorder %s2597_s23, 1  ;;  %v2607_v3 = vmov 0   ;;  %v304_v5 = vld [vmem:[%s3997_s2 + $0x28] sm:$0xff]  ;;  %vm620_vm0 = vcmask 1041408  }
  0x17   : > { %v299_v2 = vld [vmem:[%s3997_s2] sm:$0xff]  ;;  %2526 = vset.pattern.permute.xlu2 %v2607_v3  ;;  %2525 = vset.pattern.permute.xlu1 %v2607_v3  ;;  %v302_v6 = vld [vmem:[%s3997_s2 + $0x18] sm:$0xff]  ;;  %v300_v7 = vld [vmem:[%s3997_s2 + $0x8] sm:$0xff]  ;;  %vm571_vm1 = vcmask 31744   ;;  %s265_s13 = sld [smem:[#allocation2]]  ;;  %s2432_s16 = sshll.u32 %s2597_s23, 1 }
  0x18   : > { %2524 = vset.pattern.permute.xlu0 %v2607_v3  ;;  %353 = vperm.xlu2 %2526, %v303_v0   ;;  %s246_s14 = scalar_select %p245_p11, %s2597_s23, 1  ;;  %v307_v10 = vld [vmem:[%s3997_s2 + $0x40] sm:$0xff]  ;;  %v306_v13 = vld [vmem:[%s3997_s2 + $0x38] sm:$0xff]  ;;  %v305_v14 = vld [vmem:[%s3997_s2 + $0x30] sm:$0xff]  ;;  %vm2130_vm2 = vcmask 1040384  }
  0x19   : > { %343 = vperm.xlu1 %2525, %v301_v1   ;;  %333 = vperm.xlu0 %2524, %v299_v2   ;;  %v2436_v17 = vld [vmem:[%s3996_s1] sm:$0xff]  ;;  %v310_v19 = vld [vmem:[%s3997_s2 + $0x58] sm:$0xff]  ;;  %v309_v20 = vld [vmem:[%s3997_s2 + $0x50] sm:$0xff]  ;;  %s2151_s19 = scalar_lea.hbm %s4000_s5, %s2432_s16  ;;  %s2547_s11 = scalar_lea.hbm %s4000_s5, 4 }
  0x1a   : > { %s2435_s15 = sshll.u32 %s246_s14, 3  ;;  %v2452_v18 = vld [vmem:[%s3996_s1 + $0x80] sm:$0xff]  ;;  %v308_v21 = vld [vmem:[%s3997_s2 + $0x48] sm:$0xff]  ;;  %v313_v22 = vld [vmem:[%s3997_s2 + $0x70] sm:$0xff]  ;;  %s241_s14 = sand.u32 1, %s2589_s21  }
  0x1b   : > { %s252_s18 = scalar_lea.vmem %s3995_s0, %s2435_s15  ;;  %v312_v23 = vld [vmem:[%s3997_s2 + $0x68] sm:$0xff]  ;;  %v311_v24 = vld [vmem:[%s3997_s2 + $0x60] sm:$0xff]  ;;  %v314_v29 = vld [vmem:[%s3997_s2 + $0x78] sm:$0xff]  ;;  %s2236_s15 = sshll.u32 %s241_s14, 1 }
  0x1c   : > { %v256_v4 = vld [vmem:[%s252_s18] sm:$0xff]  ;;  %v2437_v25 = vld [vmem:[%s3996_s1 + $0x8] sm:$0xff]  ;;  %v318_v31 = vld [vmem:[%s3997_s2 + $0x98] sm:$0xff]  ;;  %s243_s4 = scalar_lea.vmem [#allocation3], %s2236_s15  ;;  %s2155_s28 = sshll.u32 %s2151_s19, 4  ;;  %s2156_s28 = int_to_ptr.hbm [resolvable:$true] %s2155_s28 }
  0x1d   : > { %258 = vst [vmem:[#allocation1] ss:$2 sm:$0xff] %v256_v4  ;;  %v2453_v26 = vld [vmem:[%s3996_s1 + $0x88] sm:$0xff]  ;;  %v315_v28 = vld [vmem:[%s3997_s2 + $0x80] sm:$0xff]  ;;  %v317_v32 = vld [vmem:[%s3997_s2 + $0x90] sm:$0xff]  ;;  %s2153_s26 = sshll.u32 %s243_s4, 4  ;;  %s2154_s26 = int_to_ptr.vmem [resolvable:$true] %s2153_s26 }
  0x1e   : > { %v316_v27 = vld [vmem:[%s3997_s2 + $0x88] sm:$0xff]  ;;  %v319_v30 = vld [vmem:[%s3997_s2 + $0xa0] sm:$0xff]  ;;  %v2438_v33 = vld [vmem:[%s3996_s1 + $0x10] sm:$0xff]  ;;  %s2139_s23 = scalar_lea.sflag [#allocation4], %s241_s14  ;;  %s2541_s30 = sshra.s32 %s2156_s28, 4  ;;  %s2542_s30 = int_to_ptr.hbm [resolvable:$true] %s2541_s30 }
  0x1f   : > { %v2454_v34 = vld [vmem:[%s3996_s1 + $0x90] sm:$0xff]  ;;  %v322_v35 = vld [vmem:[%s3997_s2 + $0xb8] sm:$0xff]  ;;  %v320_v37 = vld [vmem:[%s3997_s2 + $0xa8] sm:$0xff]  ;;  %s2543_s8 = scalar_lea.hbm %s2542_s30, 2  ;;  %p2548_p1 = scmp.lt.s32.totalorder %s2542_s30, %s4000_s5 }
  0x20   : > { %358 = vperm.xlu2 %2526, %v304_v5   ;;  %v321_v36 = vld [vmem:[%s3997_s2 + $0xb0] sm:$0xff]  ;;  %v324_v39 = vld [vmem:[%s3997_s2 + $0xc8] sm:$0xff]  ;;  %v323_v40 = vld [vmem:[%s3997_s2 + $0xc0] sm:$0xff]  ;;  %p2544_p12 = scmp.ne.s32.totalorder %s2542_s30, %s2543_s8  ;;  %p2549_p2 = scmp.lt.s32.totalorder %s2547_s11, %s2543_s8 }
  0x21   : > { %348 = vperm.xlu1 %2525, %v302_v6   ;;  %338 = vperm.xlu0 %2524, %v300_v7   ;;  %v325_v38 = vld [vmem:[%s3997_s2 + $0xd0] sm:$0xff]  ;;  %v2439_v41 = vld [vmem:[%s3996_s1 + $0x18] sm:$0xff]  ;;  %v328_v43 = vld [vmem:[%s3997_s2 + $0xe8] sm:$0xff] }
  0x22   : > { %v2455_v42 = vld [vmem:[%s3996_s1 + $0x98] sm:$0xff]  ;;  %v327_v44 = vld [vmem:[%s3997_s2 + $0xe0] sm:$0xff]  ;;  %v329_v48 = vld [vmem:[%s3997_s2 + $0xf0] sm:$0xff]  ;;  %p2545_p13 = pnand %p2544_p12, %p2681_p4  ;;  %p2550_p3 = por %p2549_p2, %p2548_p1 }
  0x23   : > { %v326_v45 = vld [vmem:[%s3997_s2 + $0xd8] sm:$0xff]  ;;  %v869_v46 = vld [vmem:[%s3998_s3] sm:$0xff]  ;;  %v871_v52 = vld [vmem:[%s3998_s3 + $0x10] sm:$0xff] }
  0x24   : > { %v259_v8 = vld.sshfl [vmem:[#allocation1] sm:$0xff pattern:$0x75316420]  ;;  %v260_v9 = vld.sshfl [vmem:[#allocation1 + $0x8] sm:$0xff pattern:$0x75316420]  ;;  %p2546_p0 = pneg %p2545_p13 }
  0x25   : > { %v263_v11 = vpack.c.bf16 %v259_v8, %v259_v8  ;;  %v264_v12 = vpack.c.bf16 %v260_v9, %v260_v9  ;;  %v330_v47 = vld [vmem:[%s3997_s2 + $0xf8] sm:$0xff]  ;;  %v2440_v49 = vld [vmem:[%s3996_s1 + $0x20] sm:$0xff]  ;;  %v870_v53 = vld [vmem:[%s3998_s3 + $0x8] sm:$0xff] }
  0x26   : > { %v2456_v50 = vld [vmem:[%s3996_s1 + $0xa0] sm:$0xff]  ;;  %v872_v51 = vld [vmem:[%s3998_s3 + $0x18] sm:$0xff]  ;;  %v875_v55 = vld [vmem:[%s3998_s3 + $0x30] sm:$0xff]  ;;  %p2551_p5 = pnand %p2550_p3, %p2546_p0 }
  0x27   : > { %v622_v15 = vsel %vm620_vm0, %v263_v11, 0  ;;  %v625_v16 = vsel %vm620_vm0, %v264_v12, 0  ;;  %v874_v56 = vld [vmem:[%s3998_s3 + $0x28] sm:$0xff]  ;;  %v873_v57 = vld [vmem:[%s3998_s3 + $0x20] sm:$0xff]  ;;  %v876_v63 = vld [vmem:[%s3998_s3 + $0x38] sm:$0xff] }
  0x28   : > { %373 = vperm.xlu2 %2526, %v307_v10   ;;  %634 = vmatpush.bf16.msra.mxu0 %v622_v15  ;;  %v2441_v58 = vld [vmem:[%s3996_s1 + $0x28] sm:$0xff]  ;;  %v877_v62 = vld [vmem:[%s3998_s3 + $0x40] sm:$0xff]  ;;  %v880_v2 = vld [vmem:[%s3998_s3 + $0x58] sm:$0xff] }
  0x29   : > { %368 = vperm.xlu1 %2525, %v306_v13   ;;  %363 = vperm.xlu0 %2524, %v305_v14   ;;  %v2457_v59 = vld [vmem:[%s3996_s1 + $0xa8] sm:$0xff]  ;;  %v881_v1 = vld [vmem:[%s3998_s3 + $0x60] sm:$0xff]  ;;  %v879_v3 = vld [vmem:[%s3998_s3 + $0x50] sm:$0xff] }
  0x2a   : > { %723 = vmatpush.bf16.msra.mxu1 %v625_v16  ;;  %1560 = vmatpush.bf16.msra.mxu2 %v622_v15  ;;  %v878_v61 = vld [vmem:[%s3998_s3 + $0x48] sm:$0xff]  ;;  %v2442_v4 = vld [vmem:[%s3996_s1 + $0x30] sm:$0xff]  ;;  %v884_v9 = vld [vmem:[%s3998_s3 + $0x78] sm:$0xff] }
  0x2b   : > { %1649 = vmatpush.bf16.msra.mxu3 %v625_v16  ;;  %2303 = vmatmul.msk.bf16.vlgmr.msra.gmra.mxu0 %vm571_vm1, %v2436_v17  ;;  %v2458_v5 = vld [vmem:[%s3996_s1 + $0xb0] sm:$0xff]  ;;  %v882_v11 = vld [vmem:[%s3998_s3 + $0x68] sm:$0xff] }
  0x2c   : > { %v883_v10 = vld [vmem:[%s3998_s3 + $0x70] sm:$0xff]  ;;  %v886_v16 = vld [vmem:[%s3998_s3 + $0x88] sm:$0xff] }
  0x2d   : > { %2319 = vmatmul.msk.bf16.vlgmr.msra.gmra.mxu1 %vm571_vm1, %v2436_v17  ;;  %2399 = vmatmul.msk.bf16.vlgmr.msra.gmra.mxu2 %vm571_vm1, %v2452_v18  ;;  %v887_v15 = vld [vmem:[%s3998_s3 + $0x90] sm:$0xff]  ;;  %v885_v17 = vld [vmem:[%s3998_s3 + $0x80] sm:$0xff] }
  0x2e   : > { %2415 = vmatmul.msk.bf16.vlgmr.msra.gmra.mxu3 %vm571_vm1, %v2452_v18  ;;  %v2443_v18 = vld [vmem:[%s3996_s1 + $0x38] sm:$0xff] }
  0x30   : > { %388 = vperm.xlu2 %2526, %v310_v19   ;;  %v2459_v19 = vld [vmem:[%s3996_s1 + $0xb8] sm:$0xff] }
  0x31   : > { %383 = vperm.xlu1 %2525, %v309_v20   ;;  %378 = vperm.xlu0 %2524, %v308_v21  }
  0x38   : > { %403 = vperm.xlu2 %2526, %v313_v22  }
  0x39   : > { %398 = vperm.xlu1 %2525, %v312_v23   ;;  %393 = vperm.xlu0 %2524, %v311_v24   ;;  %v890_v23 = vld [vmem:[%s3998_s3 + $0xa8] sm:$0xff]  ;;  %v889_v24 = vld [vmem:[%s3998_s3 + $0xa0] sm:$0xff] }
  0x3b   : > { %2304 = vmatmul.msk.bf16.gmra.mxu0 %vm571_vm1, %v2437_v25 }
  0x3d   : > { %2320 = vmatmul.msk.bf16.gmra.mxu1 %vm571_vm1, %v2437_v25  ;;  %2400 = vmatmul.msk.bf16.gmra.mxu2 %vm571_vm1, %v2453_v26  ;;  %v888_v25 = vld [vmem:[%s3998_s3 + $0x98] sm:$0xff] }
  0x3e   : > { %2416 = vmatmul.msk.bf16.gmra.mxu3 %vm571_vm1, %v2453_v26 }
  0x40   : > { %418 = vperm.xlu2 %2526, %v316_v27  }
  0x41   : > { %413 = vperm.xlu1 %2525, %v315_v28   ;;  %408 = vperm.xlu0 %2524, %v314_v29   ;;  %v893_v29 = vld [vmem:[%s3998_s3 + $0xc0] sm:$0xff] }
  0x48   : > { %433 = vperm.xlu2 %2526, %v319_v30   ;;  %v892_v30 = vld [vmem:[%s3998_s3 + $0xb8] sm:$0xff] }
  0x49   : > { %428 = vperm.xlu1 %2525, %v318_v31   ;;  %423 = vperm.xlu0 %2524, %v317_v32   ;;  %v891_v31 = vld [vmem:[%s3998_s3 + $0xb0] sm:$0xff]  ;;  %v2444_v32 = vld [vmem:[%s3996_s1 + $0x40] sm:$0xff] }
  0x4b   : > { %2305 = vmatmul.msk.bf16.gmra.mxu0 %vm571_vm1, %v2438_v33 }
  0x4d   : > { %2321 = vmatmul.msk.bf16.gmra.mxu1 %vm571_vm1, %v2438_v33  ;;  %2401 = vmatmul.msk.bf16.gmra.mxu2 %vm571_vm1, %v2454_v34 }
  0x4e   : > { %2417 = vmatmul.msk.bf16.gmra.mxu3 %vm571_vm1, %v2454_v34 }
  0x50   : > { %448 = vperm.xlu2 %2526, %v322_v35   ;;  %v2460_v35 = vld [vmem:[%s3996_s1 + $0xc0] sm:$0xff] }
  0x51   : > { %443 = vperm.xlu1 %2525, %v321_v36   ;;  %438 = vperm.xlu0 %2524, %v320_v37  }
  0x58   : > { %463 = vperm.xlu2 %2526, %v325_v38  }
  0x59   : > { %458 = vperm.xlu1 %2525, %v324_v39   ;;  %453 = vperm.xlu0 %2524, %v323_v40  }
  0x5b   : > { %2306 = vmatmul.msk.bf16.gmra.mxu0 %vm571_vm1, %v2439_v41 }
  0x5d   : > { %2322 = vmatmul.msk.bf16.gmra.mxu1 %vm571_vm1, %v2439_v41  ;;  %2402 = vmatmul.msk.bf16.gmra.mxu2 %vm571_vm1, %v2455_v42  ;;  %v896_v41 = vld [vmem:[%s3998_s3 + $0xd8] sm:$0xff] }
  0x5e   : > { %2418 = vmatmul.msk.bf16.gmra.mxu3 %vm571_vm1, %v2455_v42  ;;  %v895_v42 = vld [vmem:[%s3998_s3 + $0xd0] sm:$0xff] }
  0x60   : > { %478 = vperm.xlu2 %2526, %v328_v43   ;;  %v894_v43 = vld [vmem:[%s3998_s3 + $0xc8] sm:$0xff] }
  0x61   : > { %473 = vperm.xlu1 %2525, %v327_v44   ;;  %468 = vperm.xlu0 %2524, %v326_v45  }
  0x68   : > { %903 = vperm.xlu2 %2526, %v869_v46  }
  0x69   : > { %488 = vperm.xlu1 %2525, %v330_v47   ;;  %483 = vperm.xlu0 %2524, %v329_v48  }
  0x6b   : > { %2307 = vmatmul.msk.bf16.gmra.mxu0 %vm571_vm1, %v2440_v49 }
  0x6d   : > { %2323 = vmatmul.msk.bf16.gmra.mxu1 %vm571_vm1, %v2440_v49  ;;  %2403 = vmatmul.msk.bf16.gmra.mxu2 %vm571_vm1, %v2456_v50 }
  0x6e   : > { %2419 = vmatmul.msk.bf16.gmra.mxu3 %vm571_vm1, %v2456_v50 }
  0x70   : > { %918 = vperm.xlu2 %2526, %v872_v51  }
  0x71   : > { %913 = vperm.xlu1 %2525, %v871_v52   ;;  %908 = vperm.xlu0 %2524, %v870_v53   ;;  %v899_v53 = vld [vmem:[%s3998_s3 + $0xf0] sm:$0xff] }
  0x72   : > { %v2859_v54 = vpop.permute.xlu2 %353 }
  0x78   : > { %933 = vperm.xlu2 %2526, %v875_v55   ;;  %v898_v55 = vld [vmem:[%s3998_s3 + $0xe8] sm:$0xff] }
  0x79   : > { %928 = vperm.xlu1 %2525, %v874_v56   ;;  %923 = vperm.xlu0 %2524, %v873_v57   ;;  %v897_v56 = vld [vmem:[%s3998_s3 + $0xe0] sm:$0xff]  ;;  %v2445_v57 = vld [vmem:[%s3996_s1 + $0x48] sm:$0xff] }
  0x7a   : > { %v2876_v60 = vpop.permute.xlu2 %358 }
  0x7b   : > { %2308 = vmatmul.msk.bf16.gmra.mxu0 %vm571_vm1, %v2441_v58 }
  0x7d   : > { %2324 = vmatmul.msk.bf16.gmra.mxu1 %vm571_vm1, %v2441_v58  ;;  %2404 = vmatmul.msk.bf16.gmra.mxu2 %vm571_vm1, %v2457_v59 }
  0x7e   : > { %2420 = vmatmul.msk.bf16.gmra.mxu3 %vm571_vm1, %v2457_v59 }
  0x80   : > { %948 = vperm.xlu2 %2526, %v878_v61  }
  0x81   : > { %943 = vperm.xlu1 %2525, %v877_v62   ;;  %938 = vperm.xlu0 %2524, %v876_v63   ;;  %v2461_v63 = vld [vmem:[%s3996_s1 + $0xc8] sm:$0xff] }
  0x82   : > { %v2891_v0 = vpop.permute.xlu2 %373 }
  0x88   : > { %963 = vperm.xlu2 %2526, %v881_v1  }
  0x89   : > { %958 = vperm.xlu1 %2525, %v880_v2   ;;  %953 = vperm.xlu0 %2524, %v879_v3  }
  0x8a   : > { %v2908_v6 = vpop.permute.xlu2 %388 }
  0x8b   : > { %v2910_v7 = vpop.permute.xlu1 %343  ;;  %v334_v8 = vpop.permute.xlu0 %333  ;;  %2309 = vmatmul.msk.bf16.gmra.mxu0 %vm571_vm1, %v2442_v4 }
  0x8d   : > { %2325 = vmatmul.msk.bf16.gmra.mxu1 %vm571_vm1, %v2442_v4  ;;  %2405 = vmatmul.msk.bf16.gmra.mxu2 %vm571_vm1, %v2458_v5 }
  0x8e   : > { %2421 = vmatmul.msk.bf16.gmra.mxu3 %vm571_vm1, %v2458_v5 }
  0x90   : > { %978 = vperm.xlu2 %2526, %v884_v9   ;;  %v900_v9 = vld [vmem:[%s3998_s3 + $0xf8] sm:$0xff] }
  0x91   : > { %973 = vperm.xlu1 %2525, %v883_v10   ;;  %968 = vperm.xlu0 %2524, %v882_v11  }
  0x92   : > { %v2925_v12 = vpop.permute.xlu2 %403 }
  0x93   : > { %v2927_v13 = vpop.permute.xlu1 %348  ;;  %v339_v14 = vpop.permute.xlu0 %338 }
  0x98   : > { %993 = vperm.xlu2 %2526, %v887_v15  }
  0x99   : > { %988 = vperm.xlu1 %2525, %v886_v16   ;;  %983 = vperm.xlu0 %2524, %v885_v17  }
  0x9a   : > { %v2944_v20 = vpop.permute.xlu2 %418 }
  0x9b   : > { %v2946_v21 = vpop.permute.xlu1 %368  ;;  %v2948_v22 = vpop.permute.xlu0 %363  ;;  %2310 = vmatmul.msk.bf16.gmra.mxu0 %vm571_vm1, %v2443_v18 }
  0x9d   : > { %2326 = vmatmul.msk.bf16.gmra.mxu1 %vm571_vm1, %v2443_v18  ;;  %2406 = vmatmul.msk.bf16.gmra.mxu2 %vm571_vm1, %v2459_v19 }
  0x9e   : > { %2422 = vmatmul.msk.bf16.gmra.mxu3 %vm571_vm1, %v2459_v19 }
  0xa0   : > { %1008 = vperm.xlu2 %2526, %v890_v23  }
  0xa1   : > { %1003 = vperm.xlu1 %2525, %v889_v24   ;;  %998 = vperm.xlu0 %2524, %v888_v25  }
  0xa2   : > { %v2963_v26 = vpop.permute.xlu2 %433 }
  0xa3   : > { %v2965_v27 = vpop.permute.xlu1 %383  ;;  %v2967_v28 = vpop.permute.xlu0 %378 }
  0xa8   : > { %1023 = vperm.xlu2 %2526, %v893_v29   ;;  %v636_v33 = vpop.f32.mrf.mxu0 }
  0xa9   : > { %1018 = vperm.xlu1 %2525, %v892_v30   ;;  %1013 = vperm.xlu0 %2524, %v891_v31   ;;  %v2981_v34 = vadd.f32 %v636_v33, %v334_v8  ;;  %v1237_v31 = vld [vmem:[%s3997_s2 + $0x120] sm:$0xff]  ;;  %v2446_v33 = vld [vmem:[%s3996_s1 + $0x50] sm:$0xff] }
  0xaa   : > { %v725_v36 = vpop.f32.mrf.mxu1  ;;  %v2986_v37 = vpop.permute.xlu2 %448 }
  0xab   : > { %4035 = vst [vmem:[#allocation6_spill] sm:$0xff] %v2986_v37  ;;  %v726_v38 = vadd.f32 %v725_v36, %v334_v8  ;;  %v2988_v39 = vpop.permute.xlu1 %398  ;;  %v2990_v40 = vpop.permute.xlu0 %393  ;;  %2311 = vmatmul.msk.bf16.gmra.mxu0 %vm571_vm1, %v2444_v32  ;;  %v1234_v8 = vld [vmem:[%s3997_s2 + $0x108] sm:$0xff] }
  0xad   : > { %2327 = vmatmul.msk.bf16.gmra.mxu1 %vm571_vm1, %v2444_v32  ;;  %2407 = vmatmul.msk.bf16.gmra.mxu2 %vm571_vm1, %v2460_v35  ;;  %v806_v15 = vmax.f32 %v726_v38, 0.0  ;;  %v1236_v32 = vld [vmem:[%s3997_s2 + $0x118] sm:$0xff] }
  0xae   : > { %2423 = vmatmul.msk.bf16.gmra.mxu3 %vm571_vm1, %v2460_v35 }
  0xb0   : > { %v3005_v44 = vpop.f32.mrf.mxu2  ;;  %1038 = vperm.xlu2 %2526, %v896_v41   ;;  %v638_v45 = vpop.f32.mrf.mxu0 }
  0xb1   : > { %v3007_v46 = vpop.f32.mrf.mxu3  ;;  %1033 = vperm.xlu1 %2525, %v895_v42   ;;  %1028 = vperm.xlu0 %2524, %v894_v43   ;;  %v3009_v47 = vadd.f32 %v638_v45, %v339_v14  ;;  %v2462_v42 = vld [vmem:[%s3996_s1 + $0xd0] sm:$0xff] }
  0xb2   : > { %v727_v48 = vpop.f32.mrf.mxu1  ;;  %v3011_v49 = vpop.permute.xlu2 %463 }
  0xb3   : > { %4036 = vst [vmem:[#allocation7_spill] sm:$0xff] %v3011_v49  ;;  %v3013_v50 = vadd.f32 %v727_v48, %v339_v14  ;;  %v3015_v51 = vpop.permute.xlu1 %413  ;;  %v3017_v52 = vpop.permute.xlu0 %408  ;;  %v805_v14 = vmax.f32 %v2981_v34, 0.0 }
  0xb8   : > { %v3031_v58 = vpop.f32.mrf.mxu2  ;;  %1053 = vperm.xlu2 %2526, %v899_v53   ;;  %v641_v59 = vpop.f32.mrf.mxu0 }
  0xb9   : > { %v3033_v61 = vpop.f32.mrf.mxu3  ;;  %1048 = vperm.xlu1 %2525, %v898_v55   ;;  %1043 = vperm.xlu0 %2524, %v897_v56   ;;  %v3036_v62 = vadd.f32 %v641_v59, %v2910_v7  ;;  %v1239_v59 = vld [vmem:[%s3997_s2 + $0x130] sm:$0xff] }
  0xba   : > { %v730_v1 = vpop.f32.mrf.mxu1  ;;  %v3041_v2 = vpop.permute.xlu2 %478 }
  0xbb   : > { %4037 = vst [vmem:[#allocation8_spill] sm:$0xff] %v3041_v2  ;;  %v3044_v3 = vadd.f32 %v730_v1, %v2910_v7  ;;  %v3046_v4 = vpop.permute.xlu1 %428  ;;  %v3048_v5 = vpop.permute.xlu0 %423  ;;  %2312 = vmatmul.msk.bf16.gmra.mxu0 %vm571_vm1, %v2445_v57  ;;  %v1233_v7 = vld [vmem:[%s3997_s2 + $0x100] sm:$0xff] }
  0xbd   : > { %2328 = vmatmul.msk.bf16.gmra.mxu1 %vm571_vm1, %v2445_v57  ;;  %2408 = vmatmul.msk.bf16.gmra.mxu2 %vm571_vm1, %v2461_v63  ;;  %v1240_v57 = vld [vmem:[%s3997_s2 + $0x138] sm:$0xff] }
  0xbe   : > { %2424 = vmatmul.msk.bf16.gmra.mxu3 %vm571_vm1, %v2461_v63  ;;  %v1238_v63 = vld [vmem:[%s3997_s2 + $0x128] sm:$0xff] }
  0xc0   : > { %v3063_v10 = vpop.f32.mrf.mxu2  ;;  %1272 = vperm.xlu2 %2526, %v1234_v8   ;;  %v643_v11 = vpop.f32.mrf.mxu0 }
  0xc1   : > { %v3066_v16 = vpop.f32.mrf.mxu3  ;;  %1267 = vperm.xlu1 %2525, %v1233_v7   ;;  %1058 = vperm.xlu0 %2524, %v900_v9   ;;  %v644_v17 = vadd.f32 %v643_v11, %v2927_v13 }
  0xc2   : > { %v732_v18 = vpop.f32.mrf.mxu1  ;;  %v904_v19 = vpop.permute.xlu2 %903 }
  0xc3   : > { %v733_v23 = vadd.f32 %v732_v18, %v2927_v13  ;;  %v3070_v24 = vmul.f32 %v904_v19, %v805_v14  ;;  %v3072_v25 = vmul.f32 %v904_v19, %v806_v15  ;;  %v3074_v29 = vpop.permute.xlu1 %443  ;;  %v3076_v30 = vpop.permute.xlu0 %438  ;;  %v1235_v13 = vld [vmem:[%s3997_s2 + $0x110] sm:$0xff]  ;;  %v811_v36 = vmax.f32 %v644_v17, 0.0  ;;  %v1242_v18 = vld [vmem:[%s3997_s2 + $0x148] sm:$0xff]  ;;  %v1241_v19 = vld [vmem:[%s3997_s2 + $0x140] sm:$0xff] }
  0xc4   : > { %v1243_v17 = vld [vmem:[%s3997_s2 + $0x150] sm:$0xff] }
  0xc5   : > { %v812_v38 = vmax.f32 %v733_v23, 0.0  ;;  %v2447_v23 = vld [vmem:[%s3996_s1 + $0x58] sm:$0xff] }
  0xc8   : > { %v3090_v34 = vpop.f32.mrf.mxu2  ;;  %1287 = vperm.xlu2 %2526, %v1237_v31   ;;  %v3092_v35 = vpop.f32.mrf.mxu0 }
  0xc9   : > { %v3094_v41 = vpop.f32.mrf.mxu3  ;;  %1282 = vperm.xlu1 %2525, %v1236_v32   ;;  %1277 = vperm.xlu0 %2524, %v1235_v13  }
  0xca   : > { %v3099_v43 = vpop.f32.mrf.mxu1  ;;  %v919_v45 = vpop.permute.xlu2 %918 }
  0xcb   : > { %v3101_v48 = vmul.f32 %v919_v45, %v811_v36  ;;  %v3103_v53 = vmul.f32 %v919_v45, %v812_v38  ;;  %v3105_v55 = vpop.permute.xlu1 %458  ;;  %v3107_v56 = vpop.permute.xlu0 %453  ;;  %2313 = vmatmul.msk.bf16.gmra.mxu0 %vm571_vm1, %v2446_v33  ;;  %v2463_v36 = vld [vmem:[%s3996_s1 + $0xd8] sm:$0xff] }
  0xcc   : > { %4038 = vst [vmem:[#allocation9_spill] sm:$0xff] %v3105_v55 }
  0xcd   : > { %4039 = vst [vmem:[#allocation10_spill] sm:$0xff] %v3107_v56  ;;  %2329 = vmatmul.msk.bf16.gmra.mxu1 %vm571_vm1, %v2446_v33  ;;  %2409 = vmatmul.msk.bf16.gmra.mxu2 %vm571_vm1, %v2462_v42 }
  0xce   : > { %2425 = vmatmul.msk.bf16.gmra.mxu3 %vm571_vm1, %v2462_v42 }
  0xd0   : > { %v3122_v1 = vpop.f32.mrf.mxu2  ;;  %1302 = vperm.xlu2 %2526, %v1240_v57   ;;  %v648_v8 = vpop.f32.mrf.mxu0 }
  0xd1   : > { %v3124_v7 = vpop.f32.mrf.mxu3  ;;  %1297 = vperm.xlu1 %2525, %v1239_v59   ;;  %1292 = vperm.xlu0 %2524, %v1238_v63  }
  0xd2   : > { %v737_v9 = vpop.f32.mrf.mxu1  ;;  %v934_v11 = vpop.permute.xlu2 %933 }
  0xd3   : > { %v3126_v14 = vpop.permute.xlu1 %473  ;;  %v3128_v15 = vpop.permute.xlu0 %468 }
  0xd4   : > { %4040 = vst [vmem:[#allocation11_spill] sm:$0xff] %v3126_v14 }
  0xd5   : > { %4041 = vst [vmem:[#allocation12_spill] sm:$0xff] %v3128_v15 }
  0xd8   : > { %v3142_v31 = vpop.f32.mrf.mxu2  ;;  %1317 = vperm.xlu2 %2526, %v1243_v17   ;;  %v651_v32 = vpop.f32.mrf.mxu0 }
  0xd9   : > { %v3144_v13 = vpop.f32.mrf.mxu3  ;;  %1312 = vperm.xlu1 %2525, %v1242_v18   ;;  %1307 = vperm.xlu0 %2524, %v1241_v19   ;;  %v652_v33 = vadd.f32 %v651_v32, %v2948_v22  ;;  %v1246_v19 = vld [vmem:[%s3997_s2 + $0x168] sm:$0xff]  ;;  %v1244_v32 = vld [vmem:[%s3997_s2 + $0x158] sm:$0xff] }
  0xda   : > { %v740_v38 = vpop.f32.mrf.mxu1  ;;  %v3150_v42 = vpop.permute.xlu2 %948 }
  0xdb   : > { %v817_v45 = vmax.f32 %v652_v33, 0.0  ;;  %v741_v57 = vadd.f32 %v740_v38, %v2948_v22  ;;  %v3153_v59 = vpop.permute.xlu1 %488  ;;  %v3155_v63 = vpop.permute.xlu0 %483  ;;  %2314 = vmatmul.msk.bf16.gmra.mxu0 %vm571_vm1, %v2447_v23  ;;  %v1245_v22 = vld [vmem:[%s3997_s2 + $0x160] sm:$0xff] }
  0xdc   : > { %4042 = vst [vmem:[#allocation13_spill] sm:$0xff] %v3153_v59  ;;  %v808_v59 = vmax.f32 %v3013_v50, 0.0  ;;  %v736_v50 = vadd.f32 %v3099_v43, %v2859_v54 }
  0xdd   : > { %4043 = vst [vmem:[#allocation14_spill] sm:$0xff] %v3155_v63  ;;  %v3158_v17 = vmul.f32 %v934_v11, %v817_v45  ;;  %v818_v18 = vmax.f32 %v741_v57, 0.0  ;;  %2330 = vmatmul.msk.bf16.gmra.mxu1 %vm571_vm1, %v2447_v23  ;;  %2410 = vmatmul.msk.bf16.gmra.mxu2 %vm571_vm1, %v2463_v36  ;;  %v807_v57 = vmax.f32 %v3009_v47, 0.0  ;;  %v809_v63 = vmax.f32 %v3036_v62, 0.0  ;;  %v1249_v62 = vld [vmem:[%s3997_s2 + $0x180] sm:$0xff] }
  0xde   : > { %2426 = vmatmul.msk.bf16.gmra.mxu3 %vm571_vm1, %v2463_v36  ;;  %v647_v47 = vadd.f32 %v3092_v35, %v2859_v54  ;;  %v1247_v54 = vld [vmem:[%s3997_s2 + $0x170] sm:$0xff]  ;;  %v2448_v35 = vld [vmem:[%s3996_s1 + $0x60] sm:$0xff] }
  0xdf   : > { %v3172_v33 = vmul.f32 %v934_v11, %v818_v18  ;;  %v810_v11 = vmax.f32 %v3044_v3, 0.0  ;;  %v649_v3 = vadd.f32 %v648_v8, %v2876_v60 }
  0xe0   : > { %v3174_v38 = vpop.f32.mrf.mxu2  ;;  %1332 = vperm.xlu2 %2526, %v1246_v19   ;;  %v653_v23 = vpop.f32.mrf.mxu0 }
  0xe1   : > { %v3176_v45 = vpop.f32.mrf.mxu3  ;;  %1327 = vperm.xlu1 %2525, %v1245_v22   ;;  %1322 = vperm.xlu0 %2524, %v1244_v32   ;;  %v3179_v36 = vadd.f32 %v653_v23, %v2946_v21 }
  0xe2   : > { %v742_v18 = vpop.f32.mrf.mxu1  ;;  %v3185_v2 = vpop.permute.xlu2 %963 }
  0xe3   : > { %v3188_v19 = vadd.f32 %v742_v18, %v2946_v21  ;;  %v914_v14 = vpop.permute.xlu1 %913  ;;  %v909_v22 = vpop.permute.xlu0 %908  ;;  %v738_v21 = vadd.f32 %v737_v9, %v2876_v60  ;;  %v2464_v9 = vld [vmem:[%s3996_s1 + $0xe0] sm:$0xff] }
  0xe4   : > { %v1065_v32 = vmul.f32 %v914_v14, %v809_v63  ;;  %v1066_v15 = vmul.f32 %v914_v14, %v810_v11  ;;  %v1063_v23 = vmul.f32 %v909_v22, %v807_v57  ;;  %v1064_v49 = vmul.f32 %v909_v22, %v808_v59  ;;  %v1248_v59 = vld [vmem:[%s3997_s2 + $0x178] sm:$0xff] }
  0xe5   : > { %v815_v57 = vmax.f32 %v649_v3, 0.0  ;;  %v816_v11 = vmax.f32 %v738_v21, 0.0  ;;  %v1252_v3 = vld [vmem:[%s3997_s2 + $0x198] sm:$0xff] }
  0xe6   : > { %v1125_v18 = vadd.f32 %v1063_v23, %v3070_v24  ;;  %v1162_v14 = vadd.f32 %v1064_v49, %v3072_v25  ;;  %v813_v24 = vmax.f32 %v647_v47, 0.0  ;;  %v814_v49 = vmax.f32 %v736_v50, 0.0 }
  0xe8   : > { %v1126_v43 = vadd.f32 %v1125_v18, %v1065_v32  ;;  %v1163_v8 = vadd.f32 %v1162_v14, %v1066_v15  ;;  %v3210_v63 = vpop.f32.mrf.mxu2  ;;  %1347 = vperm.xlu2 %2526, %v1249_v62   ;;  %v656_v60 = vpop.f32.mrf.mxu0 }
  0xe9   : > { %v3212_v25 = vpop.f32.mrf.mxu3  ;;  %1342 = vperm.xlu1 %2525, %v1248_v59   ;;  %1337 = vperm.xlu0 %2524, %v1247_v54  }
  0xea   : > { %v745_v22 = vpop.f32.mrf.mxu1  ;;  %v3217_v23 = vpop.permute.xlu2 %978  ;;  %v1127_v15 = vadd.f32 %v1126_v43, %v3101_v48  ;;  %v1164_v32 = vadd.f32 %v1163_v8, %v3103_v53  ;;  %v657_v48 = vadd.f32 %v656_v60, %v2891_v0  ;;  %v1251_v43 = vld [vmem:[%s3997_s2 + $0x190] sm:$0xff] }
  0xeb   : > { %v929_v62 = vpop.permute.xlu1 %928  ;;  %v924_v47 = vpop.permute.xlu0 %923  ;;  %2315 = vmatmul.msk.bf16.gmra.mxu0 %vm571_vm1, %v2448_v35  ;;  %v746_v53 = vadd.f32 %v745_v22, %v2891_v0  ;;  %v819_v0 = vmax.f32 %v3179_v36, 0.0 }
  0xec   : > { %v1071_v50 = vmul.f32 %v929_v62, %v815_v57  ;;  %v1072_v18 = vmul.f32 %v929_v62, %v816_v11  ;;  %v1069_v14 = vmul.f32 %v924_v47, %v813_v24  ;;  %v1070_v59 = vmul.f32 %v924_v47, %v814_v49 }
  0xed   : > { %2331 = vmatmul.msk.bf16.gmra.mxu1 %vm571_vm1, %v2448_v35  ;;  %2411 = vmatmul.msk.bf16.gmra.mxu2 %vm571_vm1, %v2464_v9  ;;  %v1250_v35 = vld [vmem:[%s3997_s2 + $0x188] sm:$0xff]  ;;  %v820_v57 = vmax.f32 %v3188_v19, 0.0  ;;  %v821_v22 = vmax.f32 %v657_v48, 0.0 }
  0xee   : > { %v1128_v21 = vadd.f32 %v1127_v15, %v1069_v14  ;;  %v1165_v54 = vadd.f32 %v1164_v32, %v1070_v59  ;;  %2427 = vmatmul.msk.bf16.gmra.mxu3 %vm571_vm1, %v2464_v9  ;;  %v822_v15 = vmax.f32 %v746_v53, 0.0  ;;  %v1255_v53 = vld [vmem:[%s3997_s2 + $0x1b0] sm:$0xff] }
  0xf0   : > { %v1129_v8 = vadd.f32 %v1128_v21, %v1071_v50  ;;  %v1166_v24 = vadd.f32 %v1165_v54, %v1072_v18  ;;  %v3236_v49 = vpop.f32.mrf.mxu2  ;;  %1362 = vperm.xlu2 %2526, %v1252_v3   ;;  %v658_v60 = vpop.f32.mrf.mxu0 }
  0xf1   : > { %4044 = vst [vmem:[#allocation15_spill] sm:$0xff] %v3236_v49  ;;  %v3240_v11 = vpop.f32.mrf.mxu3  ;;  %1357 = vperm.xlu1 %2525, %v1251_v43   ;;  %1352 = vperm.xlu0 %2524, %v1250_v35   ;;  %v659_v9 = vadd.f32 %v658_v60, %v2967_v28 }
  0xf2   : > { %4045 = vst [vmem:[#allocation16_spill] sm:$0xff] %v3240_v11  ;;  %v747_v32 = vpop.f32.mrf.mxu1  ;;  %v3243_v62 = vpop.permute.xlu2 %993  ;;  %v1130_v47 = vadd.f32 %v1129_v8, %v3158_v17  ;;  %v1167_v50 = vadd.f32 %v1166_v24, %v3172_v33  ;;  %v1254_v33 = vld [vmem:[%s3997_s2 + $0x1a8] sm:$0xff] }
  0xf3   : > { %v823_v18 = vmax.f32 %v659_v9, 0.0  ;;  %v748_v36 = vadd.f32 %v747_v32, %v2967_v28  ;;  %v944_v14 = vpop.permute.xlu1 %943  ;;  %v939_v19 = vpop.permute.xlu0 %938  ;;  %v1253_v28 = vld [vmem:[%s3997_s2 + $0x1a0] sm:$0xff]  ;;  %v2449_v24 = vld [vmem:[%s3996_s1 + $0x68] sm:$0xff] }
  0xf4   : > { %v1077_v59 = vmul.f32 %v944_v14, %v821_v22  ;;  %v1078_v3 = vmul.f32 %v944_v14, %v822_v15  ;;  %v1075_v21 = vmul.f32 %v939_v19, %v819_v0  ;;  %v1076_v54 = vmul.f32 %v939_v19, %v820_v57 }
  0xf5   : > { %v1079_v43 = vmul.f32 %v3150_v42, %v823_v18  ;;  %v824_v48 = vmax.f32 %v748_v36, 0.0 }
  0xf6   : > { %v1131_v35 = vadd.f32 %v1130_v47, %v1075_v21  ;;  %v1168_v17 = vadd.f32 %v1167_v50, %v1076_v54  ;;  %v1258_v54 = vld [vmem:[%s3997_s2 + $0x1c8] sm:$0xff] }
  0xf7   : > { %v1080_v8 = vmul.f32 %v3150_v42, %v824_v48  ;;  %v2465_v42 = vld [vmem:[%s3996_s1 + $0xe8] sm:$0xff] }
  0xf8   : > { %v1132_v60 = vadd.f32 %v1131_v35, %v1077_v59  ;;  %v1169_v0 = vadd.f32 %v1168_v17, %v1078_v3  ;;  %v3262_v57 = vpop.f32.mrf.mxu2  ;;  %1377 = vperm.xlu2 %2526, %v1255_v53   ;;  %v661_v9 = vpop.f32.mrf.mxu0 }
  0xf9   : > { %4046 = vst [vmem:[#allocation17_spill] sm:$0xff] %v3262_v57  ;;  %v3264_v22 = vpop.f32.mrf.mxu3  ;;  %1372 = vperm.xlu1 %2525, %v1254_v33   ;;  %1367 = vperm.xlu0 %2524, %v1253_v28   ;;  %v662_v15 = vadd.f32 %v661_v9, %v2965_v27 }
  0xfa   : > { %4047 = vst [vmem:[#allocation18_spill] sm:$0xff] %v3264_v22  ;;  %v750_v32 = vpop.f32.mrf.mxu1  ;;  %v3270_v47 = vpop.permute.xlu2 %1008  ;;  %v1133_v50 = vadd.f32 %v1132_v60, %v1079_v43  ;;  %v1170_v18 = vadd.f32 %v1169_v0, %v1080_v8  ;;  %v1256_v43 = vld [vmem:[%s3997_s2 + $0x1b8] sm:$0xff] }
  0xfb   : > { %v825_v36 = vmax.f32 %v662_v15, 0.0  ;;  %v751_v14 = vadd.f32 %v750_v32, %v2965_v27  ;;  %v959_v19 = vpop.permute.xlu1 %958  ;;  %v954_v59 = vpop.permute.xlu0 %953  ;;  %2316 = vmatmul.msk.bf16.gmra.mxu0 %vm571_vm1, %v2449_v24  ;;  %v1257_v27 = vld [vmem:[%s3997_s2 + $0x1c0] sm:$0xff] }
  0xfd   : > { %v826_v3 = vmax.f32 %v751_v14, 0.0  ;;  %v1081_v21 = vmul.f32 %v954_v59, %v825_v36  ;;  %2332 = vmatmul.msk.bf16.gmra.mxu1 %vm571_vm1, %v2449_v24  ;;  %2412 = vmatmul.msk.bf16.gmra.mxu2 %vm571_vm1, %v2465_v42  ;;  %v1260_v36 = vld [vmem:[%s3997_s2 + $0x1d8] sm:$0xff]  ;;  %v1259_v14 = vld [vmem:[%s3997_s2 + $0x1d0] sm:$0xff] }
  0xfe   : > { %2428 = vmatmul.msk.bf16.gmra.mxu3 %vm571_vm1, %v2465_v42 }
  0xff   : > { %v1082_v48 = vmul.f32 %v954_v59, %v826_v3  ;;  %v1134_v53 = vadd.f32 %v1133_v50, %v1081_v21 }
 0x100   : > { %v3286_v35 = vpop.f32.mrf.mxu2  ;;  %1392 = vperm.xlu2 %2526, %v1258_v54   ;;  %v663_v17 = vpop.f32.mrf.mxu0 }
 0x101   : > { %v1171_v33 = vadd.f32 %v1170_v18, %v1082_v48  ;;  %v3288_v28 = vpop.f32.mrf.mxu3  ;;  %1387 = vperm.xlu1 %2525, %v1257_v27   ;;  %1382 = vperm.xlu0 %2524, %v1256_v43   ;;  %v664_v8 = vadd.f32 %v663_v17, %v2908_v6  ;;  %v1261_v18 = vld [vmem:[%s3997_s2 + $0x1e0] sm:$0xff] }
 0x102   : > { %v752_v24 = vpop.f32.mrf.mxu1  ;;  %v3291_v60 = vpop.permute.xlu2 %1023 }
 0x103   : > { %4048 = vst [vmem:[#allocation19_spill] sm:$0xff] %v3291_v60  ;;  %v827_v0 = vmax.f32 %v664_v8, 0.0  ;;  %v753_v9 = vadd.f32 %v752_v24, %v2908_v6  ;;  %v3294_v15 = vpop.permute.xlu1 %973  ;;  %v969_v42 = vpop.permute.xlu0 %968  ;;  %v2450_v6 = vld [vmem:[%s3996_s1 + $0x70] sm:$0xff] }
 0x105   : > { %v1083_v32 = vmul.f32 %v959_v19, %v827_v0  ;;  %v828_v50 = vmax.f32 %v753_v9, 0.0 }
 0x107   : > { %v1135_v59 = vadd.f32 %v1134_v53, %v1083_v32  ;;  %v1084_v3 = vmul.f32 %v959_v19, %v828_v50  ;;  %v2466_v53 = vld [vmem:[%s3996_s1 + $0xf0] sm:$0xff]  ;;  %v1264_v50 = vld [vmem:[%s3997_s2 + $0x1f8] sm:$0xff] }
 0x108   : > { %v3308_v21 = vpop.f32.mrf.mxu2  ;;  %1407 = vperm.xlu2 %2526, %v1261_v18   ;;  %v666_v54 = vpop.f32.mrf.mxu0  ;;  %v1262_v18 = vld [vmem:[%s3997_s2 + $0x1e8] sm:$0xff] }
 0x109   : > { %4049 = vst [vmem:[#allocation20_spill] sm:$0xff] %v3308_v21  ;;  %v1172_v27 = vadd.f32 %v1171_v33, %v1084_v3  ;;  %v3310_v43 = vpop.f32.mrf.mxu3  ;;  %1402 = vperm.xlu1 %2525, %v1260_v36   ;;  %1397 = vperm.xlu0 %2524, %v1259_v14   ;;  %v667_v48 = vadd.f32 %v666_v54, %v2990_v40 }
 0x10a   : > { %4050 = vst [vmem:[#allocation21_spill] sm:$0xff] %v3310_v43  ;;  %v755_v19 = vpop.f32.mrf.mxu1  ;;  %v3316_v17 = vpop.permute.xlu2 %1038 }
 0x10b   : > { %4051 = vst [vmem:[#allocation22_spill] sm:$0xff] %v3316_v17  ;;  %v829_v8 = vmax.f32 %v667_v48, 0.0  ;;  %v756_v24 = vadd.f32 %v755_v19, %v2990_v40  ;;  %v3319_v0 = vpop.permute.xlu1 %988  ;;  %v3321_v9 = vpop.permute.xlu0 %983  ;;  %2317 = vmatmul.msk.bf16.gmra.mxu0 %vm571_vm1, %v2450_v6  ;;  %v1263_v40 = vld [vmem:[%s3997_s2 + $0x1f0] sm:$0xff] }
 0x10d   : > { %v1085_v33 = vmul.f32 %v3185_v2, %v829_v8  ;;  %v830_v32 = vmax.f32 %v756_v24, 0.0  ;;  %2333 = vmatmul.msk.bf16.gmra.mxu1 %vm571_vm1, %v2450_v6  ;;  %2413 = vmatmul.msk.bf16.gmra.mxu2 %vm571_vm1, %v2466_v53 }
 0x10e   : > { %2429 = vmatmul.msk.bf16.gmra.mxu3 %vm571_vm1, %v2466_v53 }
 0x10f   : > { %v1136_v36 = vadd.f32 %v1135_v59, %v1085_v33  ;;  %v1086_v14 = vmul.f32 %v3185_v2, %v830_v32 }
 0x110   : > { %v3338_v3 = vpop.f32.mrf.mxu2  ;;  %1422 = vperm.xlu2 %2526, %v1264_v50   ;;  %v668_v6 = vpop.f32.mrf.mxu0  ;;  %v1796_v50 = vld [vmem:[%s3998_s3 + $0x108] sm:$0xff] }
 0x111   : > { %v1173_v54 = vadd.f32 %v1172_v27, %v1086_v14  ;;  %v3340_v48 = vpop.f32.mrf.mxu3  ;;  %1417 = vperm.xlu1 %2525, %v1263_v40   ;;  %1412 = vperm.xlu0 %2524, %v1262_v18   ;;  %v669_v53 = vadd.f32 %v668_v6, %v2988_v39  ;;  %v1797_v27 = vld [vmem:[%s3998_s3 + $0x110] sm:$0xff]  ;;  %v1795_v40 = vld [vmem:[%s3998_s3 + $0x100] sm:$0xff]  ;;  %v2451_v14 = vld [vmem:[%s3996_s1 + $0x78] sm:$0xff] }
 0x112   : > { %v757_v19 = vpop.f32.mrf.mxu1  ;;  %v3343_v8 = vpop.permute.xlu2 %1053 }
 0x113   : > { %4052 = vst [vmem:[#allocation23_spill] sm:$0xff] %v3343_v8  ;;  %v831_v24 = vmax.f32 %v669_v53, 0.0  ;;  %v758_v17 = vadd.f32 %v757_v19, %v2988_v39  ;;  %v3346_v59 = vpop.permute.xlu1 %1003  ;;  %v3348_v2 = vpop.permute.xlu0 %998 }
 0x115   : > { %v1087_v33 = vmul.f32 %v969_v42, %v831_v24  ;;  %v832_v32 = vmax.f32 %v758_v17, 0.0 }
 0x117   : > { %v1137_v18 = vadd.f32 %v1136_v36, %v1087_v33  ;;  %v1088_v39 = vmul.f32 %v969_v42, %v832_v32  ;;  %v2467_v36 = vld [vmem:[%s3996_s1 + $0xf8] sm:$0xff] }
 0x118   : > { %v3362_v6 = vpop.f32.mrf.mxu2  ;;  %1839 = vperm.xlu2 %2526, %v1797_v27   ;;  %v671_v17 = vpop.f32.mrf.mxu0 }
 0x119   : > { %v1174_v53 = vadd.f32 %v1173_v54, %v1088_v39  ;;  %v3364_v19 = vpop.f32.mrf.mxu3  ;;  %1834 = vperm.xlu1 %2525, %v1796_v50   ;;  %1829 = vperm.xlu0 %2524, %v1795_v40   ;;  %v672_v24 = vadd.f32 %v671_v17, %v2925_v12  ;;  %v1800_v40 = vld [vmem:[%s3998_s3 + $0x128] sm:$0xff]  ;;  %v1798_v39 = vld [vmem:[%s3998_s3 + $0x118] sm:$0xff] }
 0x11a   : > { %v760_v42 = vpop.f32.mrf.mxu1  ;;  %v3370_v33 = vpop.permute.xlu2 %1272 }
 0x11b   : > { %v833_v32 = vmax.f32 %v672_v24, 0.0  ;;  %v761_v8 = vadd.f32 %v760_v42, %v2925_v12  ;;  %v3373_v55 = vpop.permute.xlu1 %1018  ;;  %v3375_v27 = vpop.permute.xlu0 %1013  ;;  %2318 = vmatmul.msk.bf16.gmra.mxu0 %vm571_vm1, %v2451_v14  ;;  %v1799_v12 = vld [vmem:[%s3998_s3 + $0x120] sm:$0xff] }
 0x11c   : > { %4053 = vst [vmem:[#allocation24_spill] sm:$0xff] %v3373_v55 }
 0x11d   : > { %v1089_v54 = vmul.f32 %v3294_v15, %v833_v32  ;;  %v834_v50 = vmax.f32 %v761_v8, 0.0  ;;  %2334 = vmatmul.msk.bf16.gmra.mxu1 %vm571_vm1, %v2451_v14  ;;  %2414 = vmatmul.msk.bf16.gmra.mxu2 %vm571_vm1, %v2467_v36 }
 0x11e   : > { %2430 = vmatmul.msk.bf16.gmra.mxu3 %vm571_vm1, %v2467_v36 }
 0x11f   : > { %v1138_v17 = vadd.f32 %v1137_v18, %v1089_v54  ;;  %v1090_v8 = vmul.f32 %v3294_v15, %v834_v50 }
 0x120   : > { %v3392_v14 = vpop.f32.mrf.mxu2  ;;  %1854 = vperm.xlu2 %2526, %v1800_v40   ;;  %v673_v24 = vpop.f32.mrf.mxu0  ;;  %v1802_v40 = vld [vmem:[%s3998_s3 + $0x138] sm:$0xff] }
 0x121   : > { %v1175_v42 = vadd.f32 %v1174_v53, %v1090_v8  ;;  %v3394_v32 = vpop.f32.mrf.mxu3  ;;  %1849 = vperm.xlu1 %2525, %v1799_v12   ;;  %1844 = vperm.xlu0 %2524, %v1798_v39   ;;  %v674_v36 = vadd.f32 %v673_v24, %v3017_v52  ;;  %v1803_v53 = vld [vmem:[%s3998_s3 + $0x140] sm:$0xff]  ;;  %v1801_v12 = vld [vmem:[%s3998_s3 + $0x130] sm:$0xff] }
 0x122   : > { %v762_v60 = vpop.f32.mrf.mxu1  ;;  %v3397_v55 = vpop.permute.xlu2 %1287 }
 0x123   : > { %v835_v56 = vmax.f32 %v674_v36, 0.0  ;;  %v763_v37 = vadd.f32 %v762_v60, %v3017_v52  ;;  %v3400_v18 = vpop.permute.xlu1 %1033  ;;  %v3402_v15 = vpop.permute.xlu0 %1028 }
 0x124   : > { %4054 = vst [vmem:[#allocation25_spill] sm:$0xff] %v3400_v18 }
 0x125   : > { %4055 = vst [vmem:[#allocation26_spill] sm:$0xff] %v3402_v15  ;;  %v1091_v54 = vmul.f32 %v3217_v23, %v835_v56  ;;  %v836_v50 = vmax.f32 %v763_v37, 0.0 }
 0x127   : > { %v1139_v52 = vadd.f32 %v1138_v17, %v1091_v54  ;;  %v1092_v60 = vmul.f32 %v3217_v23, %v836_v50 }
 0x128   : > { %v3415_v39 = vpop.f32.mrf.mxu2  ;;  %1869 = vperm.xlu2 %2526, %v1803_v53   ;;  %v676_v56 = vpop.f32.mrf.mxu0 }
 0x129   : > { %v1176_v37 = vadd.f32 %v1175_v42, %v1092_v60  ;;  %v3417_v8 = vpop.f32.mrf.mxu3  ;;  %1864 = vperm.xlu1 %2525, %v1802_v40   ;;  %1859 = vperm.xlu0 %2524, %v1801_v12   ;;  %v677_v24 = vadd.f32 %v676_v56, %v3015_v51  ;;  %v1806_v40 = vld [vmem:[%s3998_s3 + $0x158] sm:$0xff] }
 0x12a   : > { %v765_v36 = vpop.f32.mrf.mxu1  ;;  %v1303_v18 = vpop.permute.xlu2 %1302 }
 0x12b   : > { %v837_v15 = vmax.f32 %v677_v24, 0.0  ;;  %v766_v43 = vadd.f32 %v765_v36, %v3015_v51  ;;  %v3422_v17 = vadd.f32 %v3210_v63, %v1303_v18  ;;  %v3425_v23 = vadd.f32 %v3212_v25, %v1303_v18  ;;  %v3427_v54 = vpop.permute.xlu1 %1048  ;;  %v3429_v42 = vpop.permute.xlu0 %1043  ;;  %v1805_v51 = vld [vmem:[%s3998_s3 + $0x150] sm:$0xff]  ;;  %v1804_v63 = vld [vmem:[%s3998_s3 + $0x148] sm:$0xff] }
 0x12c   : > { %4056 = vst [vmem:[#allocation27_spill] sm:$0xff] %v3427_v54 }
 0x12d   : > { %4057 = vst [vmem:[#allocation28_spill] sm:$0xff] %v3429_v42  ;;  %v1093_v50 = vmul.f32 %v3321_v9, %v837_v15  ;;  %v838_v53 = vmax.f32 %v766_v43, 0.0 }
 0x12f   : > { %v1140_v25 = vadd.f32 %v1139_v52, %v1093_v50  ;;  %v1094_v18 = vmul.f32 %v3321_v9, %v838_v53 }
 0x130   : > { %v1602_v12 = vpop.f32.mrf.mxu2  ;;  %1884 = vperm.xlu2 %2526, %v1806_v40   ;;  %v678_v60 = vpop.f32.mrf.mxu0  ;;  %v1809_v40 = vld [vmem:[%s3998_s3 + $0x170] sm:$0xff] }
 0x131   : > { %v1177_v15 = vadd.f32 %v1176_v37, %v1094_v18  ;;  %v1691_v43 = vpop.f32.mrf.mxu3  ;;  %1879 = vperm.xlu1 %2525, %v1805_v51   ;;  %1874 = vperm.xlu0 %2524, %v1804_v63   ;;  %v679_v56 = vadd.f32 %v678_v60, %v2944_v20 }
 0x132   : > { %v767_v24 = vpop.f32.mrf.mxu1  ;;  %v1318_v36 = vpop.permute.xlu2 %1317 }
 0x133   : > { %v839_v54 = vmax.f32 %v679_v56, 0.0  ;;  %v768_v42 = vadd.f32 %v767_v24, %v2944_v20  ;;  %v3445_v21 = vadd.f32 %v3286_v35, %v1318_v36  ;;  %v3448_v52 = vadd.f32 %v3288_v28, %v1318_v36  ;;  %v3450_v9 = vpop.permute.xlu1 %1267  ;;  %v3452_v50 = vpop.permute.xlu0 %1058  ;;  %v1808_v20 = vld [vmem:[%s3998_s3 + $0x168] sm:$0xff]  ;;  %v1807_v35 = vld [vmem:[%s3998_s3 + $0x160] sm:$0xff] }
 0x134   : > { %4058 = vst [vmem:[#allocation29_spill] sm:$0xff] %v3452_v50 }
 0x135   : > { %v1095_v37 = vmul.f32 %v3319_v0, %v839_v54  ;;  %v840_v53 = vmax.f32 %v768_v42, 0.0 }
 0x137   : > { %v1141_v28 = vadd.f32 %v1140_v25, %v1095_v37  ;;  %v1096_v51 = vmul.f32 %v3319_v0, %v840_v53 }
 0x138   : > { %v3465_v63 = vpop.f32.mrf.mxu2  ;;  %1899 = vperm.xlu2 %2526, %v1809_v40   ;;  %v681_v54 = vpop.f32.mrf.mxu0 }
 0x139   : > { %v1178_v42 = vadd.f32 %v1177_v15, %v1096_v51  ;;  %v3467_v18 = vpop.f32.mrf.mxu3  ;;  %1894 = vperm.xlu1 %2525, %v1808_v20   ;;  %1889 = vperm.xlu0 %2524, %v1807_v35   ;;  %v682_v60 = vadd.f32 %v681_v54, %v3048_v5  ;;  %v1812_v20 = vld [vmem:[%s3998_s3 + $0x188] sm:$0xff] }
 0x13a   : > { %v770_v56 = vpop.f32.mrf.mxu1  ;;  %v1333_v24 = vpop.permute.xlu2 %1332 }
 0x13b   : > { %v841_v36 = vmax.f32 %v682_v60, 0.0  ;;  %v771_v50 = vadd.f32 %v770_v56, %v3048_v5  ;;  %v3472_v25 = vadd.f32 %v3362_v6, %v1333_v24  ;;  %v3475_v0 = vadd.f32 %v3364_v19, %v1333_v24  ;;  %v3477_v37 = vpop.permute.xlu1 %1282  ;;  %v3479_v15 = vpop.permute.xlu0 %1277  ;;  %v1811_v5 = vld [vmem:[%s3998_s3 + $0x180] sm:$0xff]  ;;  %v1810_v6 = vld [vmem:[%s3998_s3 + $0x178] sm:$0xff] }
 0x13d   : > { %v1097_v53 = vmul.f32 %v3243_v62, %v841_v36  ;;  %v842_v40 = vmax.f32 %v771_v50, 0.0 }
 0x13f   : > { %v1142_v19 = vadd.f32 %v1141_v28, %v1097_v53  ;;  %v1098_v35 = vmul.f32 %v3243_v62, %v842_v40 }
 0x140   : > { %v3492_v51 = vpop.f32.mrf.mxu2  ;;  %1914 = vperm.xlu2 %2526, %v1812_v20   ;;  %v683_v54 = vpop.f32.mrf.mxu0  ;;  %v1815_v20 = vld [vmem:[%s3998_s3 + $0x1a0] sm:$0xff] }
 0x141   : > { %v1179_v50 = vadd.f32 %v1178_v42, %v1098_v35  ;;  %v3494_v60 = vpop.f32.mrf.mxu3  ;;  %1909 = vperm.xlu1 %2525, %v1811_v5   ;;  %1904 = vperm.xlu0 %2524, %v1810_v6   ;;  %v684_v56 = vadd.f32 %v683_v54, %v3046_v4  ;;  %v1814_v5 = vld [vmem:[%s3998_s3 + $0x198] sm:$0xff] }
 0x142   : > { %v772_v24 = vpop.f32.mrf.mxu1  ;;  %v1348_v36 = vpop.permute.xlu2 %1347 }
 0x143   : > { %v843_v11 = vmax.f32 %v684_v56, 0.0  ;;  %v773_v49 = vadd.f32 %v772_v24, %v3046_v4  ;;  %v3498_v22 = vadd.f32 %v1602_v12, %v1348_v36  ;;  %v3500_v28 = vadd.f32 %v1691_v43, %v1348_v36  ;;  %v3502_v62 = vpop.permute.xlu1 %1297  ;;  %v3504_v53 = vpop.permute.xlu0 %1292  ;;  %v1813_v4 = vld [vmem:[%s3998_s3 + $0x190] sm:$0xff] }
 0x145   : > { %4059 = vst [vmem:[#allocation30_spill] sm:$0xff] %v3498_v22  ;;  %v1099_v42 = vmul.f32 %v3348_v2, %v843_v11  ;;  %v844_v40 = vmax.f32 %v773_v49, 0.0 }
 0x146   : > { %4060 = vst [vmem:[#allocation31_spill] sm:$0xff] %v3500_v28 }
 0x147   : > { %v1143_v12 = vadd.f32 %v1142_v19, %v1099_v42  ;;  %v1100_v43 = vmul.f32 %v3348_v2, %v844_v40  ;;  %v1818_v40 = vld [vmem:[%s3998_s3 + $0x1b8] sm:$0xff] }
 0x148   : > { %1929 = vperm.xlu2 %2526, %v1815_v20   ;;  %v686_v6 = vpop.f32.mrf.mxu0  ;;  %v1609_v11 = vpop.f32.mrf.mxu2  ;;  %v1817_v20 = vld [vmem:[%s3998_s3 + $0x1b0] sm:$0xff] }
 0x149   : > { %v1180_v35 = vadd.f32 %v1179_v50, %v1100_v43  ;;  %v1698_v49 = vpop.f32.mrf.mxu3  ;;  %1924 = vperm.xlu1 %2525, %v1814_v5   ;;  %1919 = vperm.xlu0 %2524, %v1813_v4   ;;  %v687_v54 = vadd.f32 %v686_v6, %v2963_v26 }
 0x14a   : > { %v775_v56 = vpop.f32.mrf.mxu1  ;;  %v1363_v24 = vpop.permute.xlu2 %1362 }
 0x14b   : > { %v845_v36 = vmax.f32 %v687_v54, 0.0  ;;  %v776_v57 = vadd.f32 %v775_v56, %v2963_v26  ;;  %v3519_v28 = vadd.f32 %v1609_v11, %v1363_v24  ;;  %v3521_v22 = vadd.f32 %v1698_v49, %v1363_v24  ;;  %v3523_v19 = vpop.permute.xlu1 %1312  ;;  %v3525_v2 = vpop.permute.xlu0 %1307  ;;  %v1816_v26 = vld [vmem:[%s3998_s3 + $0x1a8] sm:$0xff] }
 0x14d   : > { %v1101_v50 = vmul.f32 %v3346_v59, %v845_v36  ;;  %v846_v42 = vmax.f32 %v776_v57, 0.0 }
 0x14f   : > { %v1144_v5 = vadd.f32 %v1143_v12, %v1101_v50  ;;  %v1102_v4 = vmul.f32 %v3346_v59, %v846_v42  ;;  %v1820_v50 = vld [vmem:[%s3998_s3 + $0x1c8] sm:$0xff] }
 0x150   : > { %1944 = vperm.xlu2 %2526, %v1818_v40   ;;  %v688_v43 = vpop.f32.mrf.mxu0 }
 0x151   : > { %v1181_v6 = vadd.f32 %v1180_v35, %v1102_v4  ;;  %1939 = vperm.xlu1 %2525, %v1817_v20   ;;  %1934 = vperm.xlu0 %2524, %v1816_v26   ;;  %v689_v57 = vadd.f32 %v688_v43, %v3076_v30  ;;  %v1821_v35 = vld [vmem:[%s3998_s3 + $0x1d0] sm:$0xff] }
 0x152   : > { %v777_v11 = vpop.f32.mrf.mxu1  ;;  %v3539_v49 = vpop.permute.xlu2 %1377 }
 0x153   : > { %v778_v54 = vadd.f32 %v777_v11, %v3076_v30  ;;  %v1328_v56 = vpop.permute.xlu1 %1327  ;;  %v3542_v24 = vpop.permute.xlu0 %1322  ;;  %v847_v12 = vmax.f32 %v689_v57, 0.0  ;;  %v1819_v30 = vld [vmem:[%s3998_s3 + $0x1c0] sm:$0xff] }
 0x154   : > { %v3545_v36 = vadd.f32 %v3338_v3, %v1328_v56  ;;  %v3548_v59 = vadd.f32 %v3340_v48, %v1328_v56 }
 0x155   : > { %v848_v42 = vmax.f32 %v778_v54, 0.0  ;;  %v1103_v40 = vmul.f32 %v3270_v47, %v847_v12 }
 0x157   : > { %v1104_v26 = vmul.f32 %v3270_v47, %v848_v42  ;;  %v1145_v47 = vadd.f32 %v1144_v5, %v1103_v40  ;;  %v1824_v42 = vld [vmem:[%s3998_s3 + $0x1e8] sm:$0xff]  ;;  %v1612_v40 = vpop.f32.mrf.mxu2 }
 0x158   : > { %1959 = vperm.xlu2 %2526, %v1821_v35   ;;  %v691_v3 = vpop.f32.mrf.mxu0 }
 0x159   : > { %1954 = vperm.xlu1 %2525, %v1820_v50   ;;  %1949 = vperm.xlu0 %2524, %v1819_v30   ;;  %v692_v48 = vadd.f32 %v691_v3, %v3074_v29 }
 0x15a   : > { %v780_v20 = vpop.f32.mrf.mxu1  ;;  %v3563_v56 = vpop.permute.xlu2 %1392 }
 0x15b   : > { %v849_v4 = vmax.f32 %v692_v48, 0.0  ;;  %v781_v43 = vadd.f32 %v780_v20, %v3074_v29  ;;  %v1343_v57 = vpop.permute.xlu1 %1342  ;;  %v1338_v11 = vpop.permute.xlu0 %1337  ;;  %4061 = vst [vmem:[#allocation32_spill] sm:$0xff] %v3563_v56 }
 0x15c   : > { %v3566_v54 = vadd.f32 %v3415_v39, %v1343_v57  ;;  %v3569_v35 = vadd.f32 %v3417_v8, %v1343_v57  ;;  %v3572_v12 = vadd.f32 %v3392_v14, %v1338_v11  ;;  %v3575_v50 = vadd.f32 %v3394_v32, %v1338_v11  ;;  %v1823_v39 = vld [vmem:[%s3998_s3 + $0x1e0] sm:$0xff]  ;;  %v1822_v14 = vld [vmem:[%s3998_s3 + $0x1d8] sm:$0xff] }
 0x15d   : > { %v1105_v30 = vmul.f32 %v3375_v27, %v849_v4  ;;  %v850_v29 = vmax.f32 %v781_v43, 0.0  ;;  %v1182_v8 = vadd.f32 %v1181_v6, %v1104_v26  ;;  %v1701_v4 = vpop.f32.mrf.mxu3  ;;  %v1826_v11 = vld [vmem:[%s3998_s3 + $0x1f8] sm:$0xff] }
 0x15f   : > { %v3587_v3 = vadd.f32 %v1145_v47, %v1105_v30  ;;  %v1106_v32 = vmul.f32 %v3375_v27, %v850_v29 }
 0x160   : > { %1974 = vperm.xlu2 %2526, %v1824_v42   ;;  %v3622_v42 = vpop.f32.mrf.mxu0 }
 0x161   : > { %v3590_v5 = vadd.f32 %v1182_v8, %v1106_v32  ;;  %1969 = vperm.xlu1 %2525, %v1823_v39   ;;  %1964 = vperm.xlu0 %2524, %v1822_v14  }
 0x162   : > { %v3604_v26 = vpop.permute.xlu2 %1407  ;;  %v3624_v39 = vpop.f32.mrf.mxu1 }
 0x163   : > { %4062 = vst [vmem:[#allocation33_spill] sm:$0xff] %v3590_v5  ;;  %v1358_v48 = vpop.permute.xlu1 %1357  ;;  %v1353_v20 = vpop.permute.xlu0 %1352 }
 0x164   : > { %v3593_v43 = vadd.f32 %v3492_v51, %v1358_v48  ;;  %v3596_v57 = vadd.f32 %v3494_v60, %v1358_v48  ;;  %v3599_v6 = vadd.f32 %v3465_v63, %v1353_v20  ;;  %v3602_v27 = vadd.f32 %v3467_v18, %v1353_v20  ;;  %4064 = vst [vmem:[#allocation35_spill] sm:$0xff] %v3604_v26  ;;  %v1825_v51 = vld [vmem:[%s3998_s3 + $0x1f0] sm:$0xff]  ;;  %v3614_v63 = vpop.f32.mrf.mxu2 }
 0x165   : > { %4066 = vst [vmem:[#allocation37_spill] sm:$0xff] %v3614_v63  ;;  %v3620_v29 = vpop.f32.mrf.mxu3 }
 0x166   : > { %4063 = vst [vmem:[#allocation34_spill] sm:$0xff] %v3602_v27  ;;  %v1565_v27 = vadd.f32 %v3031_v58, %v3370_v33 }
 0x167   : > { %4069 = vst [vmem:[#allocation40_spill] sm:$0xff] %v3620_v29 }
 0x169   : > { %1984 = vperm.xlu1 %2525, %v1826_v11   ;;  %1979 = vperm.xlu0 %2524, %v1825_v51  }
 0x16a   : > { %v3626_v14 = vpop.permute.xlu2 %1422 }
 0x16b   : > { %v3612_v60 = vpop.permute.xlu1 %1372  ;;  %v1368_v47 = vpop.permute.xlu0 %1367  ;;  %4070 = vst [vmem:[#allocation41_spill] sm:$0xff] %v3626_v14 }
 0x16c   : > { %4065 = vst [vmem:[#allocation36_spill] sm:$0xff] %v3612_v60  ;;  %v3616_v30 = vadd.f32 %v1612_v40, %v1368_v47  ;;  %v3618_v18 = vadd.f32 %v1701_v4, %v1368_v47  ;;  %v3632_v48 = vpop.f32.mrf.mxu2  ;;  %v3636_v40 = vpop.f32.mrf.mxu0 }
 0x16d   : > { %v3634_v20 = vpop.f32.mrf.mxu3  ;;  %v3638_v4 = vpop.f32.mrf.mxu1 }
 0x16e   : > { %4067 = vst [vmem:[#allocation38_spill] sm:$0xff] %v3616_v30 }
 0x16f   : > { %4068 = vst [vmem:[#allocation39_spill] sm:$0xff] %v3618_v18 }
 0x172   : > { %v1840_v11 = vpop.permute.xlu2 %1839 }
 0x173   : > { %v3628_v8 = vpop.permute.xlu1 %1387  ;;  %v3630_v32 = vpop.permute.xlu0 %1382 }
 0x174   : > { %4071 = vst [vmem:[#allocation42_spill] sm:$0xff] %v3628_v8  ;;  %v3644_v26 = vpop.f32.mrf.mxu2  ;;  %v3648_v56 = vpop.f32.mrf.mxu0 }
 0x175   : > { %4072 = vst [vmem:[#allocation43_spill] sm:$0xff] %v3630_v32  ;;  %v3646_v14 = vpop.f32.mrf.mxu3  ;;  %v3654_v18 = vpop.f32.mrf.mxu1 }
 0x176   : > { %4075 = vst [vmem:[#allocation46_spill] sm:$0xff] %v3644_v26 }
 0x177   : > { %4076 = vst [vmem:[#allocation47_spill] sm:$0xff] %v3646_v14  ;;  %v1652_v14 = vadd.f32 %v3007_v46, %v3450_v9 }
 0x178   : > { %4077 = vst [vmem:[#allocation48_spill] sm:$0xff] %v3648_v56 }
 0x179   : > { %4080 = vst [vmem:[#allocation51_spill] sm:$0xff] %v3654_v18  ;;  %v1657_v18 = vadd.f32 %v3066_v16, %v3479_v15  ;;  %v1732_v5 = vmax.f32 %v1652_v14, 0.0  ;;  %v1659_v14 = vadd.f32 %v3094_v41, %v3477_v37  ;;  %v1575_v41 = vadd.f32 %v3142_v31, %v3504_v53 }
 0x17a   : > { %v3656_v30 = vpop.permute.xlu2 %1854 }
 0x17b   : > { %v3640_v51 = vpop.permute.xlu1 %1402  ;;  %v3642_v47 = vpop.permute.xlu0 %1397 }
 0x17c   : > { %4073 = vst [vmem:[#allocation44_spill] sm:$0xff] %v3640_v51  ;;  %v1654_v51 = vadd.f32 %v3033_v61, %v3370_v33  ;;  %v3670_v56 = vpop.f32.mrf.mxu2 }
 0x17d   : > { %4074 = vst [vmem:[#allocation45_spill] sm:$0xff] %v3642_v47  ;;  %v1563_v47 = vadd.f32 %v3005_v44, %v3450_v9  ;;  %v3672_v33 = vpop.f32.mrf.mxu3  ;;  %v3674_v44 = vpop.f32.mrf.mxu0 }
 0x17e   : > { %v1734_v26 = vmax.f32 %v1654_v51, 0.0  ;;  %4081 = vst [vmem:[#allocation52_spill] sm:$0xff] %v3670_v56  ;;  %v1736_v51 = vmax.f32 %v1657_v18, 0.0  ;;  %v3678_v16 = vpop.f32.mrf.mxu1 }
 0x17f   : > { %v1731_v58 = vmax.f32 %v1563_v47, 0.0  ;;  %4082 = vst [vmem:[#allocation53_spill] sm:$0xff] %v3672_v33 }
 0x180   : > { %4083 = vst [vmem:[#allocation54_spill] sm:$0xff] %v3674_v44 }
 0x181   : > { %4084 = vst [vmem:[#allocation55_spill] sm:$0xff] %v3678_v16 }
 0x183   : > { %v3650_v32 = vpop.permute.xlu1 %1417  ;;  %v3652_v8 = vpop.permute.xlu0 %1412 }
 0x184   : > { %4078 = vst [vmem:[#allocation49_spill] sm:$0xff] %v3650_v32  ;;  %v1568_v32 = vadd.f32 %v3063_v10, %v3479_v15  ;;  %v3680_v15 = vpop.permute.xlu2 %1869 }
 0x185   : > { %4079 = vst [vmem:[#allocation50_spill] sm:$0xff] %v3652_v8  ;;  %v1733_v8 = vmax.f32 %v1565_v27, 0.0  ;;  %v1570_v27 = vadd.f32 %v3090_v34, %v3477_v37  ;;  %v3690_v37 = vpop.f32.mrf.mxu2 }
 0x186   : > { %v1735_v9 = vmax.f32 %v1568_v32, 0.0  ;;  %v1738_v32 = vmax.f32 %v1659_v14, 0.0  ;;  %v1752_v14 = vmax.f32 %v3448_v52, 0.0 }
 0x187   : > { %v1737_v18 = vmax.f32 %v1570_v27, 0.0  ;;  %v1746_v27 = vmax.f32 %v3425_v23, 0.0 }
 0x188   : > { %v1991_v47 = vmul.f32 %v1840_v11, %v1735_v9 }
 0x18b   : > { %v1835_v29 = vpop.permute.xlu1 %1834  ;;  %v1830_v61 = vpop.permute.xlu0 %1829 }
 0x18c   : > { %v1989_v63 = vmul.f32 %v1835_v29, %v1733_v8  ;;  %v1990_v46 = vmul.f32 %v1835_v29, %v1734_v26  ;;  %v1987_v60 = vmul.f32 %v1830_v61, %v1731_v58  ;;  %v1988_v10 = vmul.f32 %v1830_v61, %v1732_v5 }
 0x18d   : > { %v1573_v26 = vadd.f32 %v3122_v1, %v3397_v55  ;;  %v1992_v29 = vmul.f32 %v1840_v11, %v1736_v51  ;;  %v1662_v5 = vadd.f32 %v3124_v7, %v3397_v55  ;;  %v1578_v1 = vadd.f32 %v3174_v38, %v3502_v62  ;;  %v3700_v11 = vpop.f32.mrf.mxu0  ;;  %v3704_v51 = vpop.f32.mrf.mxu1 }
 0x18e   : > { %v2051_v33 = vadd.f32 %v1989_v63, %v1987_v60  ;;  %v2088_v56 = vadd.f32 %v1990_v46, %v1988_v10  ;;  %v1667_v55 = vadd.f32 %v3176_v45, %v3502_v62  ;;  %v1664_v7 = vadd.f32 %v3144_v13, %v3504_v53  ;;  %v3706_v38 = vpop.permute.xlu2 %1884 }
 0x18f   : > { %v1739_v16 = vmax.f32 %v1573_v26, 0.0  ;;  %v1740_v44 = vmax.f32 %v1662_v5, 0.0  ;;  %v1745_v10 = vmax.f32 %v3422_v17, 0.0  ;;  %v1751_v45 = vmax.f32 %v3445_v21, 0.0  ;;  %v4085_v26 = vld [vmem:[#allocation30_spill] sm:$0xff] }
 0x190   : > { %v2052_v8 = vadd.f32 %v2051_v33, %v1991_v47  ;;  %v2089_v34 = vadd.f32 %v2088_v56, %v1992_v29  ;;  %v3698_v56 = vpop.f32.mrf.mxu3  ;;  %v1741_v62 = vmax.f32 %v1575_v41, 0.0  ;;  %v1742_v47 = vmax.f32 %v1664_v7, 0.0  ;;  %v4088_v41 = vld [vmem:[#allocation18_spill] sm:$0xff]  ;;  %v4089_v7 = vld [vmem:[#allocation15_spill] sm:$0xff] }
 0x191   : > { %v1743_v29 = vmax.f32 %v1578_v1, 0.0  ;;  %v1744_v23 = vmax.f32 %v1667_v55, 0.0 }
 0x192   : > { %v1997_v5 = vmul.f32 %v3656_v30, %v1741_v62  ;;  %v4091_v62 = vld [vmem:[#allocation20_spill] sm:$0xff] }
 0x193   : > { %v1850_v58 = vpop.permute.xlu1 %1849  ;;  %v1845_v61 = vpop.permute.xlu0 %1844 }
 0x194   : > { %v1993_v60 = vmul.f32 %v1845_v61, %v1737_v18  ;;  %v1994_v63 = vmul.f32 %v1845_v61, %v1738_v32  ;;  %v1995_v33 = vmul.f32 %v1850_v58, %v1739_v16  ;;  %v1996_v46 = vmul.f32 %v1850_v58, %v1740_v44  ;;  %v4086_v18 = vld [vmem:[#allocation31_spill] sm:$0xff]  ;;  %v4087_v58 = vld [vmem:[#allocation17_spill] sm:$0xff] }
 0x195   : > { %v1757_v16 = vmax.f32 %v3472_v25, 0.0  ;;  %v1758_v44 = vmax.f32 %v3475_v0, 0.0  ;;  %v1585_v61 = vadd.f32 %v4087_v58, %v3523_v19  ;;  %v3726_v32 = vadd.f32 %v4091_v62, %v3542_v24  ;;  %v4092_v58 = vld [vmem:[#allocation21_spill] sm:$0xff] }
 0x196   : > { %v2053_v31 = vadd.f32 %v2052_v8, %v1993_v60  ;;  %v2090_v9 = vadd.f32 %v2089_v34, %v1994_v63  ;;  %v1674_v60 = vadd.f32 %v4088_v41, %v3523_v19  ;;  %v1998_v63 = vmul.f32 %v3656_v30, %v1742_v47  ;;  %v4093_v41 = vld [vmem:[#allocation6_spill] sm:$0xff]  ;;  %v4112_v25 = vld [vmem:[#allocation53_spill] sm:$0xff] }
 0x197   : > { %v3730_v17 = vadd.f32 %v4092_v58, %v3542_v24  ;;  %v694_v30 = vadd.f32 %v3622_v42, %v4093_v41  ;;  %v783_v47 = vadd.f32 %v3624_v39, %v4093_v41  ;;  %v1755_v39 = vmax.f32 %v3545_v36, 0.0 }
 0x198   : > { %v2054_v13 = vadd.f32 %v2053_v31, %v1995_v33  ;;  %v2091_v53 = vadd.f32 %v2090_v9, %v1996_v46  ;;  %v1583_v33 = vadd.f32 %v4089_v7, %v3525_v2  ;;  %v4090_v31 = vld [vmem:[#allocation16_spill] sm:$0xff]  ;;  %v3742_v7 = vpop.f32.mrf.mxu0  ;;  %v3758_v36 = vadd.f32 %v3634_v20, %v3539_v49 }
 0x199   : > { %v1672_v9 = vadd.f32 %v4090_v31, %v3525_v2  ;;  %v1750_v31 = vmax.f32 %v1674_v60, 0.0  ;;  %v1754_v2 = vmax.f32 %v3730_v17, 0.0  ;;  %v1760_v20 = vmax.f32 %v3575_v50, 0.0 }
 0x19a   : > { %v2055_v55 = vadd.f32 %v2054_v13, %v1997_v5  ;;  %v2092_v19 = vadd.f32 %v2091_v53, %v1998_v63  ;;  %v1749_v63 = vmax.f32 %v1585_v61, 0.0  ;;  %v1747_v42 = vmax.f32 %v1583_v33, 0.0 }
 0x19b   : > { %v1865_v8 = vpop.permute.xlu1 %1864  ;;  %v1860_v34 = vpop.permute.xlu0 %1859  ;;  %v1748_v58 = vmax.f32 %v1672_v9, 0.0  ;;  %v1753_v5 = vmax.f32 %v3726_v32, 0.0  ;;  %v3754_v33 = vadd.f32 %v3632_v48, %v3539_v49  ;;  %v4094_v9 = vld [vmem:[#allocation10_spill] sm:$0xff]  ;;  %v1759_v49 = vmax.f32 %v3572_v12, 0.0 }
 0x19c   : > { %v1999_v46 = vmul.f32 %v1860_v34, %v1743_v29  ;;  %v2000_v1 = vmul.f32 %v1860_v34, %v1744_v23  ;;  %v3736_v29 = vpop.f32.mrf.mxu2  ;;  %v2001_v13 = vmul.f32 %v1865_v8, %v1745_v10  ;;  %v3740_v34 = vpop.f32.mrf.mxu3  ;;  %v2002_v24 = vmul.f32 %v1865_v8, %v1746_v27 }
 0x19d   : > { %v1756_v10 = vmax.f32 %v3548_v59, 0.0  ;;  %v851_v27 = vmax.f32 %v694_v30, 0.0  ;;  %v852_v8 = vmax.f32 %v783_v47, 0.0  ;;  %v2003_v59 = vmul.f32 %v3680_v15, %v1747_v42  ;;  %v4103_v42 = vld [vmem:[#allocation48_spill] sm:$0xff]  ;;  %v4110_v47 = vld [vmem:[#allocation42_spill] sm:$0xff] }
 0x19e   : > { %v2056_v23 = vadd.f32 %v2055_v55, %v1999_v46  ;;  %v2093_v53 = vadd.f32 %v2092_v19, %v2000_v1  ;;  %v3746_v46 = vpop.f32.mrf.mxu1  ;;  %v3748_v55 = vpop.permute.xlu2 %1899  ;;  %v2004_v1 = vmul.f32 %v3680_v15, %v1748_v58  ;;  %v697_v32 = vadd.f32 %v3636_v40, %v4094_v9 }
 0x19f   : > { %v786_v17 = vadd.f32 %v3638_v4, %v4094_v9  ;;  %v4098_v9 = vld [vmem:[#allocation40_spill] sm:$0xff]  ;;  %v3826_v0 = vadd.f32 %v4112_v25, %v4110_v47 }
 0x1a0   : > { %v2057_v62 = vadd.f32 %v2056_v23, %v2001_v13  ;;  %v2094_v41 = vadd.f32 %v2093_v53, %v2002_v24  ;;  %v4095_v24 = vld [vmem:[#allocation24_spill] sm:$0xff]  ;;  %v853_v58 = vmax.f32 %v697_v32, 0.0  ;;  %v3784_v21 = vpop.f32.mrf.mxu0 }
 0x1a1   : > { %v1107_v15 = vmul.f32 %v4095_v24, %v851_v27  ;;  %v1108_v53 = vmul.f32 %v4095_v24, %v852_v8  ;;  %v854_v12 = vmax.f32 %v786_v17, 0.0 }
 0x1a2   : > { %v2058_v13 = vadd.f32 %v2057_v62, %v2003_v59  ;;  %v2095_v23 = vadd.f32 %v2094_v41, %v2004_v1  ;;  %v4097_v59 = vld [vmem:[#allocation37_spill] sm:$0xff] }
 0x1a3   : > { %v1880_v61 = vpop.permute.xlu1 %1879  ;;  %v1875_v60 = vpop.permute.xlu0 %1874 }
 0x1a4   : > { %v2005_v19 = vmul.f32 %v1875_v60, %v1749_v63  ;;  %v2006_v30 = vmul.f32 %v1875_v60, %v1750_v31  ;;  %v2007_v40 = vmul.f32 %v1880_v61, %v1751_v45  ;;  %v2008_v4 = vmul.f32 %v1880_v61, %v1752_v14  ;;  %v3778_v41 = vpop.f32.mrf.mxu2  ;;  %v3782_v8 = vpop.f32.mrf.mxu3  ;;  %v4096_v60 = vld [vmem:[#allocation36_spill] sm:$0xff]  ;;  %v4106_v61 = vld [vmem:[#allocation54_spill] sm:$0xff] }
 0x1a5   : > { %v1147_v14 = vadd.f32 %v3587_v3, %v1107_v15  ;;  %v3790_v1 = vadd.f32 %v4097_v59, %v4096_v60  ;;  %v3794_v32 = vadd.f32 %v4098_v9, %v4096_v60  ;;  %v2010_v3 = vmul.f32 %v3706_v38, %v1754_v2  ;;  %v4102_v9 = vld [vmem:[#allocation9_spill] sm:$0xff]  ;;  %v4105_v2 = vld [vmem:[#allocation7_spill] sm:$0xff] }
 0x1a6   : > { %v2059_v63 = vadd.f32 %v2058_v13, %v2005_v19  ;;  %v2096_v31 = vadd.f32 %v2095_v23, %v2006_v30  ;;  %v4099_v30 = vld [vmem:[#allocation33_spill] sm:$0xff]  ;;  %v4100_v23 = vld [vmem:[#allocation34_spill] sm:$0xff]  ;;  %v3800_v15 = vpop.f32.mrf.mxu1  ;;  %v699_v27 = vadd.f32 %v4103_v42, %v4102_v9  ;;  %v702_v48 = vadd.f32 %v4106_v61, %v4105_v2 }
 0x1a7   : > { %v1184_v13 = vadd.f32 %v4099_v30, %v1108_v53  ;;  %v1766_v24 = vmax.f32 %v4100_v23, 0.0  ;;  %v4104_v53 = vld [vmem:[#allocation51_spill] sm:$0xff] }
 0x1a8   : > { %v2060_v52 = vadd.f32 %v2059_v63, %v2007_v40  ;;  %v2097_v45 = vadd.f32 %v2096_v31, %v2008_v4  ;;  %v2009_v40 = vmul.f32 %v3706_v38, %v1753_v5  ;;  %v1915_v4 = vpop.permute.xlu2 %1914  ;;  %v4101_v63 = vld [vmem:[#allocation19_spill] sm:$0xff]  ;;  %v788_v30 = vadd.f32 %v4104_v53, %v4102_v9 }
 0x1a9   : > { %v1109_v31 = vmul.f32 %v4101_v63, %v853_v58  ;;  %v1110_v59 = vmul.f32 %v4101_v63, %v854_v12  ;;  %v4107_v58 = vld [vmem:[#allocation55_spill] sm:$0xff]  ;;  %v855_v53 = vmax.f32 %v699_v27, 0.0 }
 0x1aa   : > { %v2061_v23 = vadd.f32 %v2060_v52, %v2009_v40  ;;  %v2098_v50 = vadd.f32 %v2097_v45, %v2010_v3  ;;  %v791_v12 = vadd.f32 %v4107_v58, %v4105_v2  ;;  %v4108_v40 = vld [vmem:[#allocation38_spill] sm:$0xff]  ;;  %v4109_v63 = vld [vmem:[#allocation39_spill] sm:$0xff]  ;;  %v856_v38 = vmax.f32 %v788_v30, 0.0  ;;  %v4111_v2 = vld [vmem:[#allocation52_spill] sm:$0xff] }
 0x1ab   : > { %v1895_v17 = vpop.permute.xlu1 %1894  ;;  %v1890_v19 = vpop.permute.xlu0 %1889  ;;  %v1148_v52 = vadd.f32 %v1147_v14, %v1109_v31  ;;  %v1185_v45 = vadd.f32 %v1184_v13, %v1110_v59  ;;  %v1771_v3 = vmax.f32 %v4108_v40, 0.0  ;;  %v3822_v58 = vadd.f32 %v4111_v2, %v4110_v47  ;;  %v4115_v30 = vld [vmem:[#allocation43_spill] sm:$0xff] }
 0x1ac   : > { %v2011_v62 = vmul.f32 %v1890_v19, %v1755_v39  ;;  %v2012_v60 = vmul.f32 %v1890_v19, %v1756_v10  ;;  %v2013_v39 = vmul.f32 %v1895_v17, %v1757_v16  ;;  %v2014_v10 = vmul.f32 %v1895_v17, %v1758_v44  ;;  %v3830_v27 = vpop.f32.mrf.mxu2 }
 0x1ad   : > { %v2015_v16 = vmul.f32 %v3748_v55, %v1759_v49  ;;  %v2016_v44 = vmul.f32 %v3748_v55, %v1760_v20  ;;  %v857_v14 = vmax.f32 %v702_v48, 0.0  ;;  %v858_v17 = vmax.f32 %v791_v12, 0.0  ;;  %v4117_v49 = vld [vmem:[#allocation47_spill] sm:$0xff]  ;;  %v3844_v55 = vpop.f32.mrf.mxu3  ;;  %v711_v48 = vpop.f32.mrf.mxu0 }
 0x1ae   : > { %v2062_v42 = vadd.f32 %v2061_v23, %v2011_v62  ;;  %v2099_v19 = vadd.f32 %v2098_v50, %v2012_v60  ;;  %v4113_v13 = vmax.f32 %v3566_v54, 0.0  ;;  %v4114_v59 = vmax.f32 %v3569_v35, 0.0  ;;  %v4116_v23 = vld [vmem:[#allocation46_spill] sm:$0xff]  ;;  %v800_v25 = vpop.f32.mrf.mxu1 }
 0x1af   : > { %v3838_v47 = vadd.f32 %v4116_v23, %v4115_v30 }
 0x1b0   : > { %v2063_v61 = vadd.f32 %v2062_v42, %v2013_v39  ;;  %v2100_v5 = vadd.f32 %v2099_v19, %v2014_v10  ;;  %v3842_v39 = vadd.f32 %v4117_v49, %v4115_v30  ;;  %v4118_v10 = vld [vmem:[#allocation26_spill] sm:$0xff]  ;;  %v4119_v19 = vld [vmem:[#allocation12_spill] sm:$0xff]  ;;  %v4121_v30 = vmax.f32 %v4086_v18, 0.0 }
 0x1b1   : > { %v1111_v42 = vmul.f32 %v4118_v10, %v855_v53  ;;  %v1112_v54 = vmul.f32 %v4118_v10, %v856_v38  ;;  %v704_v35 = vadd.f32 %v3700_v11, %v4119_v19  ;;  %v793_v2 = vadd.f32 %v3704_v51, %v4119_v19  ;;  %v4124_v38 = vld [vmem:[#allocation32_spill] sm:$0xff] }
 0x1b2   : > { %v2064_v20 = vadd.f32 %v2063_v61, %v2015_v16  ;;  %v2101_v12 = vadd.f32 %v2100_v5, %v2016_v44  ;;  %v1779_v53 = vmax.f32 %v3822_v58, 0.0  ;;  %v4122_v16 = vld [vmem:[#allocation25_spill] sm:$0xff]  ;;  %v4123_v51 = vmax.f32 %v3599_v6, 0.0 }
 0x1b3   : > { %v1910_v62 = vpop.permute.xlu1 %1909  ;;  %v1905_v50 = vpop.permute.xlu0 %1904  ;;  %v1113_v44 = vmul.f32 %v4122_v16, %v857_v14  ;;  %v1114_v11 = vmul.f32 %v4122_v16, %v858_v17  ;;  %v2022_v10 = vmul.f32 %v1915_v4, %v1766_v24  ;;  %v1186_v9 = vadd.f32 %v1185_v45, %v1112_v54 }
 0x1b4   : > { %v2017_v31 = vmul.f32 %v1905_v50, %v4113_v13  ;;  %v2018_v60 = vmul.f32 %v1905_v50, %v4114_v59  ;;  %v1930_v50 = vpop.permute.xlu2 %1929  ;;  %v4120_v13 = vmax.f32 %v4085_v26, 0.0  ;;  %v2020_v23 = vmul.f32 %v1910_v62, %v4121_v30 }
 0x1b5   : > { %v2021_v49 = vmul.f32 %v1915_v4, %v4123_v51  ;;  %v1777_v18 = vmax.f32 %v3838_v47, 0.0  ;;  %v3866_v17 = vadd.f32 %v3690_v37, %v4124_v38  ;;  %v3870_v6 = vadd.f32 %v3698_v56, %v4124_v38  ;;  %v3880_v37 = vpop.f32.mrf.mxu2  ;;  %v713_v51 = vpop.f32.mrf.mxu0 }
 0x1b6   : > { %v2019_v59 = vmul.f32 %v1910_v62, %v4120_v13  ;;  %v2065_v61 = vadd.f32 %v2064_v20, %v2017_v31  ;;  %v2102_v5 = vadd.f32 %v2101_v12, %v2018_v60  ;;  %v1149_v13 = vadd.f32 %v1148_v52, %v1111_v42 }
 0x1b7   : > { %v1778_v62 = vmax.f32 %v3842_v39, 0.0  ;;  %v859_v31 = vmax.f32 %v704_v35, 0.0  ;;  %v860_v60 = vmax.f32 %v793_v2, 0.0  ;;  %v4125_v24 = vmax.f32 %v3593_v43, 0.0  ;;  %v4127_v35 = vld [vmem:[#allocation11_spill] sm:$0xff] }
 0x1b8   : > { %v2066_v19 = vadd.f32 %v2065_v61, %v2019_v59  ;;  %v2103_v26 = vadd.f32 %v2102_v5, %v2020_v23  ;;  %v4126_v52 = vmax.f32 %v3596_v57, 0.0  ;;  %v1150_v42 = vadd.f32 %v1149_v13, %v1113_v44  ;;  %v4130_v57 = vld [vmem:[#allocation22_spill] sm:$0xff]  ;;  %v4131_v44 = vld [vmem:[#allocation8_spill] sm:$0xff] }
 0x1b9   : > { %v1187_v54 = vadd.f32 %v1186_v9, %v1114_v11  ;;  %v707_v2 = vadd.f32 %v3742_v7, %v4127_v35  ;;  %v796_v59 = vadd.f32 %v3746_v46, %v4127_v35  ;;  %v4128_v23 = vmax.f32 %v3519_v28, 0.0  ;;  %v3892_v11 = vpop.f32.mrf.mxu3  ;;  %v802_v28 = vpop.f32.mrf.mxu1 }
 0x1ba   : > { %v2067_v30 = vadd.f32 %v2066_v19, %v2021_v49  ;;  %v2104_v14 = vadd.f32 %v2103_v26, %v2022_v10  ;;  %v4129_v61 = vmax.f32 %v3521_v22, 0.0  ;;  %v1115_v16 = vmul.f32 %v4130_v57, %v859_v31 }
 0x1bb   : > { %v1925_v20 = vpop.permute.xlu1 %1924  ;;  %v1920_v12 = vpop.permute.xlu0 %1919  ;;  %v1116_v9 = vmul.f32 %v4130_v57, %v860_v60  ;;  %v709_v7 = vadd.f32 %v3784_v21, %v4131_v44  ;;  %v798_v46 = vadd.f32 %v3800_v15, %v4131_v44  ;;  %v2027_v22 = vmul.f32 %v1930_v50, %v1771_v3  ;;  %v4134_v15 = vld [vmem:[#allocation45_spill] sm:$0xff] }
 0x1bc   : > { %v2023_v4 = vmul.f32 %v1920_v12, %v4125_v24  ;;  %v2024_v45 = vmul.f32 %v1920_v12, %v4126_v52  ;;  %v2025_v56 = vmul.f32 %v1925_v20, %v4128_v23  ;;  %v2026_v43 = vmul.f32 %v1925_v20, %v4129_v61  ;;  %v1945_v19 = vpop.permute.xlu2 %1944  ;;  %v4133_v20 = vld [vmem:[#allocation14_spill] sm:$0xff]  ;;  %v4135_v24 = vld [vmem:[#allocation13_spill] sm:$0xff] }
 0x1bd   : > { %v4132_v49 = vmax.f32 %v4109_v63, 0.0  ;;  %v861_v31 = vmax.f32 %v707_v2, 0.0  ;;  %v862_v60 = vmax.f32 %v796_v59, 0.0  ;;  %v712_v21 = vadd.f32 %v711_v48, %v4133_v20 }
 0x1be   : > { %v2068_v5 = vadd.f32 %v2067_v30, %v2023_v4  ;;  %v2105_v38 = vadd.f32 %v2104_v14, %v2024_v45  ;;  %v801_v12 = vadd.f32 %v800_v25, %v4133_v20  ;;  %v3902_v30 = vadd.f32 %v3736_v29, %v4134_v15 }
 0x1bf   : > { %v2028_v10 = vmul.f32 %v1930_v50, %v4132_v49  ;;  %v3906_v40 = vadd.f32 %v3740_v34, %v4134_v15  ;;  %v863_v50 = vmax.f32 %v709_v7, 0.0  ;;  %v864_v14 = vmax.f32 %v798_v46, 0.0  ;;  %v4138_v34 = vld [vmem:[#allocation28_spill] sm:$0xff] }
 0x1c0   : > { %v2069_v26 = vadd.f32 %v2068_v5, %v2025_v56  ;;  %v2106_v13 = vadd.f32 %v2105_v38, %v2026_v43  ;;  %v714_v4 = vadd.f32 %v713_v51, %v4135_v24  ;;  %v803_v52 = vadd.f32 %v802_v28, %v4135_v24 }
 0x1c1   : > { %v1151_v35 = vadd.f32 %v1150_v42, %v1115_v16  ;;  %v1188_v25 = vadd.f32 %v1187_v54, %v1116_v9  ;;  %v4136_v2 = vmax.f32 %v3790_v1, 0.0  ;;  %v4137_v59 = vmax.f32 %v3794_v32, 0.0  ;;  %v4141_v16 = vld [vmem:[#allocation27_spill] sm:$0xff] }
 0x1c2   : > { %v2070_v3 = vadd.f32 %v2069_v26, %v2027_v22  ;;  %v2107_v63 = vadd.f32 %v2106_v13, %v2028_v10  ;;  %v1117_v56 = vmul.f32 %v4138_v34, %v861_v31  ;;  %v1118_v61 = vmul.f32 %v4138_v34, %v862_v60  ;;  %v1637_v31 = vpop.f32.mrf.mxu2 }
 0x1c3   : > { %v1940_v45 = vpop.permute.xlu1 %1939  ;;  %v1935_v48 = vpop.permute.xlu0 %1934  ;;  %v865_v43 = vmax.f32 %v712_v21, 0.0  ;;  %v866_v5 = vmax.f32 %v801_v12, 0.0  ;;  %v4139_v38 = vmax.f32 %v3754_v33, 0.0  ;;  %v4140_v44 = vmax.f32 %v3758_v36, 0.0  ;;  %v4142_v36 = vld [vmem:[#allocation23_spill] sm:$0xff] }
 0x1c4   : > { %v2029_v29 = vmul.f32 %v1935_v48, %v4136_v2  ;;  %v2030_v23 = vmul.f32 %v1935_v48, %v4137_v59  ;;  %v1119_v1 = vmul.f32 %v4141_v16, %v863_v50  ;;  %v1120_v9 = vmul.f32 %v4141_v16, %v864_v14  ;;  %v1726_v21 = vpop.f32.mrf.mxu3  ;;  %v1960_v12 = vpop.permute.xlu2 %1959 }
 0x1c5   : > { %v2031_v57 = vmul.f32 %v1940_v45, %v4139_v38  ;;  %v2032_v7 = vmul.f32 %v1940_v45, %v4140_v44  ;;  %v867_v32 = vmax.f32 %v714_v4, 0.0  ;;  %v868_v46 = vmax.f32 %v803_v52, 0.0  ;;  %v4145_v52 = vld [vmem:[#allocation44_spill] sm:$0xff] }
 0x1c6   : > { %v2071_v42 = vadd.f32 %v2070_v3, %v2029_v29  ;;  %v2108_v54 = vadd.f32 %v2107_v63, %v2030_v23  ;;  %v2033_v51 = vmul.f32 %v1945_v19, %v1777_v18  ;;  %v2034_v28 = vmul.f32 %v1945_v19, %v1778_v62  ;;  %v4143_v62 = vld [vmem:[#allocation29_spill] sm:$0xff]  ;;  %v4146_v23 = vld [vmem:[#allocation35_spill] sm:$0xff] }
 0x1c7   : > { %v1152_v49 = vadd.f32 %v1151_v35, %v1117_v56  ;;  %v1189_v10 = vadd.f32 %v1188_v25, %v1118_v61  ;;  %v1121_v26 = vmul.f32 %v4142_v36, %v865_v43  ;;  %v1122_v13 = vmul.f32 %v4142_v36, %v866_v5  ;;  %v4147_v43 = vld [vmem:[#allocation50_spill] sm:$0xff] }
 0x1c8   : > { %v2072_v22 = vadd.f32 %v2071_v42, %v2031_v57  ;;  %v2109_v33 = vadd.f32 %v2108_v54, %v2032_v7  ;;  %v1781_v60 = vmax.f32 %v3866_v17, 0.0  ;;  %v1782_v20 = vmax.f32 %v3870_v6, 0.0 }
 0x1c9   : > { %v1153_v15 = vadd.f32 %v1152_v49, %v1119_v1  ;;  %v1190_v39 = vadd.f32 %v1189_v10, %v1120_v9  ;;  %v1123_v19 = vmul.f32 %v4143_v62, %v867_v32  ;;  %v1124_v3 = vmul.f32 %v4143_v62, %v868_v46 }
 0x1ca   : > { %v2073_v47 = vadd.f32 %v2072_v22, %v2033_v51  ;;  %v2110_v18 = vadd.f32 %v2109_v33, %v2034_v28  ;;  %v1783_v14 = vmax.f32 %v3902_v30, 0.0  ;;  %v1784_v24 = vmax.f32 %v3906_v40, 0.0  ;;  %v1639_v9 = vpop.f32.mrf.mxu2 }
 0x1cb   : > { %v1955_v63 = vpop.permute.xlu1 %1954  ;;  %v1950_v50 = vpop.permute.xlu0 %1949  ;;  %v4144_v6 = vmax.f32 %v3826_v0, 0.0  ;;  %v1630_v45 = vadd.f32 %v3778_v41, %v4145_v52  ;;  %v1719_v48 = vadd.f32 %v3782_v8, %v4145_v52  ;;  %v1154_v35 = vadd.f32 %v1153_v15, %v1121_v26 }
 0x1cc   : > { %v2035_v17 = vmul.f32 %v1950_v50, %v1779_v53  ;;  %v1191_v25 = vadd.f32 %v1190_v39, %v1122_v13  ;;  %v2037_v2 = vmul.f32 %v1955_v63, %v1781_v60  ;;  %v2038_v29 = vmul.f32 %v1955_v63, %v1782_v20  ;;  %v1728_v32 = vpop.f32.mrf.mxu3  ;;  %v1975_v49 = vpop.permute.xlu2 %1974 }
 0x1cd   : > { %v2036_v4 = vmul.f32 %v1950_v50, %v4144_v6  ;;  %v1633_v40 = vadd.f32 %v3830_v27, %v4146_v23  ;;  %v1722_v58 = vadd.f32 %v3844_v55, %v4146_v23  ;;  %v1155_v0 = vadd.f32 %v1154_v35, %v1123_v19 }
 0x1ce   : > { %v2074_v59 = vadd.f32 %v2073_v47, %v2035_v17  ;;  %v1192_v53 = vadd.f32 %v1191_v25, %v1124_v3  ;;  %v2039_v34 = vmul.f32 %v1960_v12, %v1783_v14  ;;  %v2040_v56 = vmul.f32 %v1960_v12, %v1784_v24  ;;  %v4149_v12 = vld [vmem:[#allocation41_spill] sm:$0xff] }
 0x1cf   : > { %v2111_v30 = vadd.f32 %v2110_v18, %v2036_v4  ;;  %v1635_v8 = vadd.f32 %v3880_v37, %v4147_v43  ;;  %v1724_v5 = vadd.f32 %v3892_v11, %v4147_v43  ;;  %v1785_v38 = vmax.f32 %v1630_v45, 0.0  ;;  %v4148_v37 = vld [vmem:[#allocation49_spill] sm:$0xff] }
 0x1d0   : > { %v2075_v41 = vadd.f32 %v2074_v59, %v2037_v2  ;;  %v1786_v57 = vmax.f32 %v1719_v48, 0.0  ;;  %v1156_v27 = vrot.slane %v1155_v0, 4  ;;  %v1193_v42 = vrot.slane %v1192_v53, 4 }
 0x1d1   : > { %v2112_v61 = vadd.f32 %v2111_v30, %v2038_v29  ;;  %v1787_v16 = vmax.f32 %v1633_v40, 0.0  ;;  %v1788_v1 = vmax.f32 %v1722_v58, 0.0  ;;  %v1789_v28 = vmax.f32 %v1635_v8, 0.0 }
 0x1d2   : > { %v2076_v44 = vadd.f32 %v2075_v41, %v2039_v34  ;;  %v1790_v22 = vmax.f32 %v1724_v5, 0.0  ;;  %v1638_v33 = vadd.f32 %v1637_v31, %v4148_v37  ;;  %v1727_v11 = vadd.f32 %v1726_v21, %v4148_v37 }
 0x1d3   : > { %v2113_v7 = vadd.f32 %v2112_v61, %v2040_v56  ;;  %v1970_v54 = vpop.permute.xlu1 %1969  ;;  %v1965_v55 = vpop.permute.xlu0 %1964  ;;  %v1157_v60 = vadd.f32 %v1156_v27, %v1155_v0  ;;  %v1194_v20 = vadd.f32 %v1193_v42, %v1192_v53  ;;  %v1640_v47 = vadd.f32 %v1639_v9, %v4149_v12 }
 0x1d4   : > { %v2041_v46 = vmul.f32 %v1965_v55, %v1785_v38  ;;  %v2042_v51 = vmul.f32 %v1965_v55, %v1786_v57  ;;  %v2043_v10 = vmul.f32 %v1970_v54, %v1787_v16  ;;  %v2044_v36 = vmul.f32 %v1970_v54, %v1788_v1 }
 0x1d5   : > { %v1729_v18 = vadd.f32 %v1728_v32, %v4149_v12  ;;  %v2045_v15 = vmul.f32 %v1975_v49, %v1789_v28  ;;  %v2046_v39 = vmul.f32 %v1975_v49, %v1790_v22  ;;  %v1791_v3 = vmax.f32 %v1638_v33, 0.0 }
 0x1d6   : > { %v2077_v26 = vadd.f32 %v2076_v44, %v2041_v46  ;;  %v2114_v13 = vadd.f32 %v2113_v7, %v2042_v51  ;;  %v1792_v63 = vmax.f32 %v1727_v11, 0.0  ;;  %v1158_v21 = vrot.slane %v1157_v60, 2 }
 0x1d7   : > { %v1793_v14 = vmax.f32 %v1640_v47, 0.0  ;;  %v1195_v6 = vrot.slane %v1194_v20, 2  ;;  %v1794_v4 = vmax.f32 %v1729_v18, 0.0  ;;  %v266_v57 = vstv %s265_s13 }
 0x1d8   : > { %v2078_v62 = vadd.f32 %v2077_v26, %v2043_v10  ;;  %v2115_v19 = vadd.f32 %v2114_v13, %v2044_v36  ;;  %v1159_v29 = vadd.f32 %v1158_v21, %v1157_v60  ;;  %v2133_v16 = vlaneseq }
 0x1d9   : > { %v1196_v59 = vadd.f32 %v1195_v6, %v1194_v20 }
 0x1da   : > { %v2079_v31 = vadd.f32 %v2078_v62, %v2045_v15  ;;  %v2116_v50 = vadd.f32 %v2115_v19, %v2046_v39  ;;  %v1160_v0 = vrot.slane %v1159_v29, 1  ;;  %vm2135_vm3 = vcmp.lt.s32.totalorder %v2133_v16, 256 }
 0x1db   : > { %v1985_v24 = vpop.permute.xlu1 %1984  ;;  %v1980_v17 = vpop.permute.xlu0 %1979  ;;  %v1197_v53 = vrot.slane %v1196_v59, 1 }
 0x1dc   : > { %v2047_v52 = vmul.f32 %v1980_v17, %v1791_v3  ;;  %v2048_v45 = vmul.f32 %v1980_v17, %v1792_v63  ;;  %v2049_v48 = vmul.f32 %v1985_v24, %v1793_v14  ;;  %v2050_v35 = vmul.f32 %v1985_v24, %v1794_v4 }
 0x1dd   : > { %v1161_v43 = vadd.f32 %v1160_v0, %v1159_v29  ;;  %v1198_v8 = vadd.f32 %v1197_v53, %v1196_v59 }
 0x1de   : > { %v2080_v25 = vadd.f32 %v2079_v31, %v2047_v52  ;;  %v2117_v2 = vadd.f32 %v2116_v50, %v2048_v45 }
 0x1df   : > { %v1199_v27 = vadd.f32 %v1161_v43, %v266_v57  ;;  %v1200_v55 = vadd.f32 %v1198_v8, %v266_v57 }
 0x1e0   : > { %v2081_v30 = vadd.f32 %v2080_v25, %v2049_v48  ;;  %v2118_v23 = vadd.f32 %v2117_v2, %v2050_v35 }
 0x1e2   : > { %v2082_v40 = vrot.slane %v2081_v30, 4  ;;  %v2119_v58 = vrot.slane %v2118_v23, 4 }
 0x1e4   : > { %v2083_v34 = vadd.f32 %v2082_v40, %v2081_v30  ;;  %v2120_v56 = vadd.f32 %v2119_v58, %v2118_v23 }
 0x1e6   : > { %v2084_v41 = vrot.slane %v2083_v34, 2  ;;  %v2121_v61 = vrot.slane %v2120_v56, 2 }
 0x1e8   : > { %v2085_v5 = vadd.f32 %v2084_v41, %v2083_v34  ;;  %v2122_v38 = vadd.f32 %v2121_v61, %v2120_v56 }
 0x1ea   : > { %v2086_v44 = vrot.slane %v2085_v5, 1  ;;  %v2123_v7 = vrot.slane %v2122_v38, 1 }
 0x1ec   : > { %v2087_v42 = vadd.f32 %v2086_v44, %v2085_v5  ;;  %v2124_v54 = vadd.f32 %v2123_v7, %v2122_v38 }
 0x1ee   : > { %v2125_v1 = vadd.f32 %v2087_v42, %v1199_v27  ;;  %v2126_v9 = vadd.f32 %v2124_v54, %v1200_v55 }
 0x1f0   : > { %v2129_v32 = vrot.slane %v2126_v9, 7 }
 0x1f2   : > { %v2131_v46 = vsel %vm2130_vm2, %v2125_v1, %v2129_v32 }
 0x1f3   : > { %2137 = vst.msk [vmem:[%s243_s4] sm:$0x3] %vm2135_vm3, %v2131_v46 }
 0x1f4   : > { %2554 = shalt.err (!%p2551_p5)
}
 0x1f5   : > { %2468 = dma.vmem_to_hbm [thread:$0]  (%p2681_p4), %s2154_s26, 32, %s2156_s28, %s2139_s23  }
 0x1f6 PF: > { %p2474_p6 = scmp.ge.s32.totalorder %s2605_s25, 2  ;;  %s2167_s14 = sand.u32 1, %s2585_s20  }
 0x1f7   : > { %s2168_s15 = scalar_lea.sflag [#allocation4], %s2167_s14 }
 0x1f8   : > { %p2471_p7 = pnand %p2474_p6, %p2688_p8 }
 0x1fa   : > { %p2472_p9 = pneg %p2471_p7 }
 0x1fc   : > { %2580 = dma.done.wait (%p2472_p9), %s2168_s15, 32  }
 0x1fd   : > { %2582 = vsyncadd (%p2472_p9), %s2168_s15, 4294967264  ;;  %s19_s25 = sadd.s32 1, %s2605_s25   ;;  %s4150_s20 = smov %s2589_s21 }
 0x1fe   : > { %p16_p10 = scmp.ge.s32.totalorder %s19_s25, 4   ;;  %s4151_s21 = smov %s2593_s22 }
 0x1ff   : > { %s4152_s22 = smov %s2694_s7  ;;  %s4153_s23 = smov %s2601_s24 }
 0x200   : > { %s4154_s24 = smov %s4156_s27  ;;  %18 = sbr.rel (!%p16_p10) target bundleno = 6 (0x6), region = 75 }
 0x205   :  { %2174 = vsyncpa [#allocation4], 1 }
 0x206   :  { %2176 = vsyncpa [#allocation4 + $0x1], 1 }

</bundles_post_ra>
